<compile_context>
chip_gen: v7x
topology: tpu7x:2x2x1
jax: 0.10.0
libtpu: 0.0.40
codegen_flags: <defaults>
</compile_context>

<pallas_src>
import math

import jax
import jax.numpy as jnp
from jax.experimental import pallas as pl
from jax.experimental.pallas import tpu as pltpu


# ----------------------------- kernels -----------------------------

def _bn_relu_pool_epilogue(acc_ref, b_ref, o_ref, W, Wp, Hh, Wh):
    """Folded-BN bias + ReLU + 2x2 max pool on the f32 accumulator.

    acc_ref holds the conv result at flat row h*Wp + w (w < W valid).  Rows 2i/2i+1 are
    read contiguously, bias/ReLU/vertical-max applied, and the result staged compactly
    at acc rows [i*W, (i+1)*W) (those rows are already consumed).  The horizontal pair
    max then needs only two whole-output stride-2 reads.
    """
    bias = b_ref[0]  # (Cout_t,)
    for i in range(Hh):
        r0 = acc_ref[pl.ds((2 * i) * Wp, W), :]        # image row 2i,   cols [0, W)
        r1 = acc_ref[pl.ds((2 * i + 1) * Wp, W), :]    # image row 2i+1, cols [0, W)
        v = jnp.maximum(jnp.maximum(r0, r1) + bias, 0.0)
        acc_ref[pl.ds(i * W, W), :] = v                # compact staging (safe: see note)
    # Note: staging row range [0, (i+1)*W) never reaches the unread sources of later
    # iterations since (i+1)*W <= 2*(i+1)*Wp for all i.
    even = acc_ref[pl.ds(0, Hh * Wh, 2), :]
    odd = acc_ref[pl.ds(1, Hh * Wh, 2), :]
    o_ref[0, :, :] = jnp.maximum(even, odd).astype(o_ref.dtype)


def _make_tap_matmul_kernel(W, Wp, Hh, Wh):
    """Layer-1 kernel: taps are pre-built host-side -> a single lane-dense matmul."""

    def kernel(x_ref, w_ref, b_ref, o_ref, acc_ref):
        # x_ref: (1, H*Wp, K1) f32 im2col, w_ref: (K1, Cout_t) f32 (scale-folded)
        acc_ref[...] = jnp.dot(x_ref[0], w_ref[...],
                               preferred_element_type=jnp.float32)
        _bn_relu_pool_epilogue(acc_ref, b_ref, o_ref, W, Wp, Hh, Wh)

    return kernel


def _make_im2col_conv_kernel(H, W, Wp, Cin, Hh, Wh):
    """Layers 2-4: in-kernel per-dh im2col (K = 5*Cin) + 5 accumulating matmuls."""
    M_out = H * Wp

    def kernel(x_ref, w_ref, b_ref, o_ref, acc_ref, col_ref):
        # x_ref:   (1, Mx, Cin) bf16 flattened zero-padded image
        # w_ref:   (5, 5*Cin, Cout_t) bf16 (scale-folded), K index = dw*Cin + c
        # col_ref: (M_out, 5*Cin) bf16 per-dh im2col scratch
        # acc_ref: (M_out, Cout_t) f32 conv accumulator
        for dh in range(5):
            for dw in range(5):
                col_ref[:, dw * Cin:(dw + 1) * Cin] = (
                    x_ref[0, pl.ds(dh * Wp + dw, M_out), :])
            part = jnp.dot(col_ref[...], w_ref[dh],
                           preferred_element_type=jnp.float32)
            if dh == 0:
                acc_ref[...] = part          # init with first result (no zero pass)
            else:
                acc_ref[...] += part
        _bn_relu_pool_epilogue(acc_ref, b_ref, o_ref, W, Wp, Hh, Wh)

    return kernel


# ----------------------------- wrapper -----------------------------

def _round_up(v, m):
    return (v + m - 1) // m * m


def _tile_bytes(rows, cols, itemsize):
    return _round_up(max(int(rows), 1), 8) * _round_up(max(int(cols), 1), 128) * itemsize


def _physical_vmem_bytes():
    try:
        return int(pltpu.get_tpu_info().vmem_capacity_bytes)
    except Exception:
        return 64 * 1024 * 1024  # conservative (v7x per-core VMEM)


def conv_block_pallas(x_nhwc, w, scale, bias, *, out_dtype=jnp.bfloat16):
    """x_nhwc: (N, H, W, Cin); w: (5, 5, Cin, Cout) HWIO.  Returns (N, H//2, W//2, Cout)."""
    N, H, W, Cin = x_nhwc.shape
    Cout = w.shape[-1]
    assert H % 2 == 0 and W % 2 == 0, (H, W)
    Hh, Wh = H // 2, W // 2
    Wp = W + 4                 # padded row length (SAME 5x5)
    M_out = H * Wp             # flattened conv-output rows (4 dead cols per image row)
    Mx = (H + 5) * Wp          # (2,3) row pad keeps the dh=4,dw=4 tap slice in bounds

    # Fold the eval-mode BN scale into the conv weights; only the bias stays for the
    # epilogue (conv is linear in w, so this is exact).
    w = w * scale.reshape(1, 1, 1, Cout)
    bias2d = bias.reshape(1, Cout).astype(jnp.float32)

    im2col_in_kernel = Cin > 1
    if im2col_in_kernel:
        cdt = jnp.bfloat16     # MXU-native operands, f32 accumulation
        xp = jnp.pad(x_nhwc.astype(cdt), ((0, 0), (2, 3), (2, 2), (0, 0)))
        x_in = xp.reshape(N, Mx, Cin)
        w_in = w.reshape(5, 5 * Cin, Cout).astype(cdt)   # K index = dw*Cin + c
        Kin, Mx_in = Cin, Mx
    else:
        # Layer 1 (Cin == 1): build the 25-tap im2col on the host (input is tiny) so the
        # kernel is one lane-dense matmul.  Keep f32 for accuracy headroom.
        cdt = jnp.float32
        xp = jnp.pad(x_nhwc[..., 0].astype(cdt), ((0, 0), (2, 3), (2, 2)))
        xf = xp.reshape(N, Mx)
        taps = [xf[:, dh * Wp + dw: dh * Wp + dw + M_out]
                for dh in range(5) for dw in range(5)]
        x_in = jnp.pad(jnp.stack(taps, axis=-1), ((0, 0), (0, 0), (0, 7)))  # K 25 -> 32
        w_in = jnp.pad(w.reshape(25, Cout), ((0, 7), (0, 0))).astype(cdt)   # (32, Cout)
        Kin, Mx_in = 32, M_out

    # Second parallel grid axis (Cout split) only when it helps megacore utilisation
    # (odd batch) and keeps lane-dense blocks (Cout_t >= 128).
    cout_tiles = 2 if (Cout >= 256 and N % 2 == 1) else 1
    Cout_t = Cout // cout_tiles

    if im2col_in_kernel:
        kernel = _make_im2col_conv_kernel(H, W, Wp, Cin, Hh, Wh)
        w_spec = pl.BlockSpec((5, 5 * Cin, Cout_t), lambda n, ct: (0, 0, ct))
        scratch = [pltpu.VMEM((M_out, Cout_t), jnp.float32),
                   pltpu.VMEM((M_out, 5 * Cin), cdt)]
        w_block_bytes = 5 * _tile_bytes(5 * Cin, Cout_t, jnp.dtype(cdt).itemsize)
        col_bytes = _tile_bytes(M_out, 5 * Cin, jnp.dtype(cdt).itemsize)
    else:
        kernel = _make_tap_matmul_kernel(W, Wp, Hh, Wh)
        w_spec = pl.BlockSpec((Kin, Cout_t), lambda n, ct: (0, ct))
        scratch = [pltpu.VMEM((M_out, Cout_t), jnp.float32)]
        w_block_bytes = _tile_bytes(Kin, Cout_t, jnp.dtype(cdt).itemsize)
        col_bytes = 0

    in_specs = [
        pl.BlockSpec((1, Mx_in, Kin), lambda n, ct: (n, 0, 0)),
        w_spec,
        pl.BlockSpec((1, Cout_t), lambda n, ct: (0, ct)),
    ]
    out_spec = pl.BlockSpec((1, Hh * Wh, Cout_t), lambda n, ct: (n, 0, ct))

    # VMEM budget: double-buffered blocks + scratch + headroom, capped by physical VMEM.
    esz = jnp.dtype(cdt).itemsize
    osz = jnp.dtype(out_dtype).itemsize
    needed = (2 * _tile_bytes(Mx_in, Kin, esz)
              + 2 * w_block_bytes
              + 2 * _tile_bytes(1, Cout_t, 4)
              + 2 * _tile_bytes(Hh * Wh, Cout_t, osz)
              + _tile_bytes(M_out, Cout_t, 4)
              + col_bytes
              + (4 << 20))
    cap = _physical_vmem_bytes() * 3 // 4
    vmem_bytes = int(min(max(needed, 32 << 20), cap))

    out = pl.pallas_call(
        kernel,
        out_shape=jax.ShapeDtypeStruct((N, Hh * Wh, Cout), out_dtype),
        grid_spec=pltpu.PrefetchScalarGridSpec(
            num_scalar_prefetch=0,
            grid=(N, cout_tiles),
            in_specs=in_specs,
            out_specs=out_spec,
            scratch_shapes=scratch,
        ),
        compiler_params=pltpu.CompilerParams(
            dimension_semantics=("parallel", "parallel"),
            vmem_limit_bytes=vmem_bytes,
        ),
    )(x_in, w_in, bias2d)

    return out.reshape(N, Hh, Wh, Cout)


def embedding_layers_forward(x, params, return_layers=False):
    """x: (B, seq_len, mel_bins) f32; params: list of (w(5,5,Cin,Cout), scale, bias).

    Returns NCHW f32 embedding (or the list [a1, a2, a3, emb] when return_layers).
    Intermediate activations stay NHWC bf16 between Pallas calls; NCHW f32 is only
    materialised for tensors that are returned.
    """
    a = x[:, :, :, None].astype(jnp.float32)  # NHWC, 1 input channel
    outs = []
    n_layers = len(params)
    for li, (w, scale, bias) in enumerate(params):
        last = li == n_layers - 1
        a = conv_block_pallas(a, w, scale, bias,
                              out_dtype=jnp.float32 if last else jnp.bfloat16)
        if return_layers:
            outs.append(jnp.transpose(a, (0, 3, 1, 2)).astype(jnp.float32))
    if return_layers:
        return outs
    return jnp.transpose(a, (0, 3, 1, 2)).astype(jnp.float32)


# ---------------- parameter init (matches init_layer / init_bn) ----------------

def he_uniform_conv(key, shape):
    kh, kw, cin, _ = shape
    n = cin * kh * kw
    std = math.sqrt(2.0 / n)
    scale = std * math.sqrt(3.0)
    return jax.random.uniform(key, shape, jnp.float32, -scale, scale)


def make_params(key):
    eps = 1e-5
    channels = [(1, 64), (64, 128), (128, 256), (256, 512)]
    keys = jax.random.split(key, len(channels))
    params = []
    for kk, (cin, cout) in zip(keys, channels):
        w = he_uniform_conv(kk, (5, 5, cin, cout))
        gamma = jnp.ones((cout,), jnp.float32)
        beta = jnp.zeros((cout,), jnp.float32)
        rmean = jnp.zeros((cout,), jnp.float32)
        rvar = jnp.ones((cout,), jnp.float32)
        scale = gamma / jnp.sqrt(rvar + eps)
        bias = beta - rmean * scale
        params.append((w, scale, bias))
    return params


# ---------------- pure-JAX reference for validation ----------------

def ref_block(x_nhwc, w, scale, bias):
    y = jax.lax.conv_general_dilated(
        x_nhwc, w, window_strides=(1, 1), padding=((2, 2), (2, 2)),
        dimension_numbers=("NHWC", "HWIO", "NHWC"),
        preferred_element_type=jnp.float32)
    y = jnp.maximum(y * scale + bias, 0.0)
    y = jax.lax.reduce_window(y, -jnp.inf, jax.lax.max,
                              (1, 2, 2, 1), (1, 2, 2, 1), "VALID")
    return y


def ref_forward(x, params):
    a = x[:, :, :, None]
    for (w, scale, bias) in params:
        a = ref_block(a, w, scale, bias)
    return jnp.transpose(a, (0, 3, 1, 2))


if __name__ == "__main__":
    key = jax.random.PRNGKey(0)
    kx, kp = jax.random.split(key)

    B, seq_len, mel_bins = 2, 32, 32
    x = jax.random.normal(kx, (B, seq_len, mel_bins), jnp.float32)
    params = make_params(kp)

    emb = jax.block_until_ready(embedding_layers_forward(x, params))
    assert emb.shape == (B, 512, seq_len // 16, mel_bins // 16), emb.shape

    ref = jax.block_until_ready(ref_forward(x, params))
    err = float(jnp.max(jnp.abs(emb - ref)) / (jnp.max(jnp.abs(ref)) + 1e-6))
    assert err < 0.05, f"normalized max error too large: {err}"

    # Also exercise the odd-batch path (Cout split across two parallel grid tiles for
    # the 256/512-channel layers).
    x1 = x[:1]
    emb1 = jax.block_until_ready(embedding_layers_forward(x1, params))
    ref1 = jax.block_until_ready(ref_forward(x1, params))
    err1 = float(jnp.max(jnp.abs(emb1 - ref1)) / (jnp.max(jnp.abs(ref1)) + 1e-6))
    assert err1 < 0.05, f"normalized max error (B=1) too large: {err1}"

    print("KERNEL_OK")
</pallas_src>

<mosaic_0001>
module attributes {stable_mosaic.version = 11 : i64} {
  func.func @kernel(%arg0: i32, %arg1: i32, %arg2: memref<1x1152x32xf32, #tpu.memory_space<vmem>>, %arg3: memref<32x64xf32, #tpu.memory_space<vmem>>, %arg4: memref<1x64xf32, #tpu.memory_space<vmem>>, %arg5: memref<1x256x64xbf16, #tpu.memory_space<vmem>>, %arg6: memref<1152x64xf32, #tpu.memory_space<vmem>>) attributes {dimension_semantics = [#tpu.dimension_semantics<parallel>, #tpu.dimension_semantics<parallel>], iteration_bounds = array<i64: 2, 1>, scalar_prefetch = 0 : i64, scratch_operands = 1 : i64, tpu.core_type = #tpu.core_type<tc>, window_params = [{transform_indices = @transform_0, window_bounds = array<i64: 1, 1152, 32>}, {transform_indices = @transform_1, window_bounds = array<i64: 32, 64>}, {transform_indices = @transform_2, window_bounds = array<i64: 1, 64>}, {transform_indices = @transform_3, window_bounds = array<i64: 1, 256, 64>}]} {
    %c0 = arith.constant 0 : index
    %c0_0 = arith.constant 0 : index
    %c0_1 = arith.constant 0 : index
    %0 = vector.load %arg2[%c0, %c0_0, %c0_1] : memref<1x1152x32xf32, #tpu.memory_space<vmem>>, vector<1x1152x32xf32>
    %1 = vector.shape_cast %0 : vector<1x1152x32xf32> to vector<1152x32xf32>
    %c0_2 = arith.constant 0 : index
    %c0_3 = arith.constant 0 : index
    %2 = vector.load %arg3[%c0_2, %c0_3] : memref<32x64xf32, #tpu.memory_space<vmem>>, vector<32x64xf32>
    %cst = arith.constant dense<0.000000e+00> : vector<1152x64xf32>
    %3 = tpu.matmul %1, %2, %cst {dimension_numbers = #tpu.dot_dimension_numbers<[1], [0], [0], [1], [0, 0, 1, 1], [], []>} : vector<1152x32xf32>, vector<32x64xf32>, vector<1152x64xf32> -> vector<1152x64xf32>
    %c0_4 = arith.constant 0 : index
    %c0_5 = arith.constant 0 : index
    %4 = vector.load %arg6[%c0_4, %c0_5] : memref<1152x64xf32, #tpu.memory_space<vmem>>, vector<1152x64xf32>
    tpu.vector_store %arg6[%c0_4, %c0_5], %3 {strides = array<i32>} : memref<1152x64xf32, #tpu.memory_space<vmem>>, vector<1152x64xf32>,
    %c0_6 = arith.constant 0 : index
    %c0_7 = arith.constant 0 : index
    %5 = vector.load %arg4[%c0_6, %c0_7] : memref<1x64xf32, #tpu.memory_space<vmem>>, vector<1x64xf32>
    %6 = vector.shape_cast %5 : vector<1x64xf32> to vector<64xf32>
    %c0_8 = arith.constant 0 : index
    %c0_9 = arith.constant 0 : index
    %7 = vector.load %arg6[%c0_8, %c0_9] : memref<1152x64xf32, #tpu.memory_space<vmem>>, vector<32x64xf32>
    %c36 = arith.constant 36 : index
    %c0_10 = arith.constant 0 : index
    %8 = vector.load %arg6[%c36, %c0_10] : memref<1152x64xf32, #tpu.memory_space<vmem>>, vector<32x64xf32>
    %9 = arith.maximumf %7, %8 : vector<32x64xf32>
    %10 = vector.shape_cast %6 : vector<64xf32> to vector<1x64xf32>
    %11 = vector.broadcast %10 : vector<1x64xf32> to vector<32x64xf32>
    %12 = arith.addf %9, %11 : vector<32x64xf32>
    %cst_11 = arith.constant 0.000000e+00 : f32
    %13 = vector.broadcast %cst_11 : f32 to vector<32x64xf32>
    %14 = arith.maximumf %12, %13 : vector<32x64xf32>
    %c0_12 = arith.constant 0 : index
    %c0_13 = arith.constant 0 : index
    %15 = vector.load %arg6[%c0_12, %c0_13] : memref<1152x64xf32, #tpu.memory_space<vmem>>, vector<32x64xf32>
    tpu.vector_store %arg6[%c0_12, %c0_13], %14 {strides = array<i32>} : memref<1152x64xf32, #tpu.memory_space<vmem>>, vector<32x64xf32>,
    %c72 = arith.constant 72 : index
    %c0_14 = arith.constant 0 : index
    %16 = vector.load %arg6[%c72, %c0_14] : memref<1152x64xf32, #tpu.memory_space<vmem>>, vector<32x64xf32>
    %c108 = arith.constant 108 : index
    %c0_15 = arith.constant 0 : index
    %17 = vector.load %arg6[%c108, %c0_15] : memref<1152x64xf32, #tpu.memory_space<vmem>>, vector<32x64xf32>
    %18 = arith.maximumf %16, %17 : vector<32x64xf32>
    %19 = vector.shape_cast %6 : vector<64xf32> to vector<1x64xf32>
    %20 = vector.broadcast %19 : vector<1x64xf32> to vector<32x64xf32>
    %21 = arith.addf %18, %20 : vector<32x64xf32>
    %cst_16 = arith.constant 0.000000e+00 : f32
    %22 = vector.broadcast %cst_16 : f32 to vector<32x64xf32>
    %23 = arith.maximumf %21, %22 : vector<32x64xf32>
    %c32 = arith.constant 32 : index
    %c0_17 = arith.constant 0 : index
    %24 = vector.load %arg6[%c32, %c0_17] : memref<1152x64xf32, #tpu.memory_space<vmem>>, vector<32x64xf32>
    tpu.vector_store %arg6[%c32, %c0_17], %23 {strides = array<i32>} : memref<1152x64xf32, #tpu.memory_space<vmem>>, vector<32x64xf32>,
    %c144 = arith.constant 144 : index
    %c0_18 = arith.constant 0 : index
    %25 = vector.load %arg6[%c144, %c0_18] : memref<1152x64xf32, #tpu.memory_space<vmem>>, vector<32x64xf32>
    %c180 = arith.constant 180 : index
    %c0_19 = arith.constant 0 : index
    %26 = vector.load %arg6[%c180, %c0_19] : memref<1152x64xf32, #tpu.memory_space<vmem>>, vector<32x64xf32>
    %27 = arith.maximumf %25, %26 : vector<32x64xf32>
    %28 = vector.shape_cast %6 : vector<64xf32> to vector<1x64xf32>
    %29 = vector.broadcast %28 : vector<1x64xf32> to vector<32x64xf32>
    %30 = arith.addf %27, %29 : vector<32x64xf32>
    %cst_20 = arith.constant 0.000000e+00 : f32
    %31 = vector.broadcast %cst_20 : f32 to vector<32x64xf32>
    %32 = arith.maximumf %30, %31 : vector<32x64xf32>
    %c64 = arith.constant 64 : index
    %c0_21 = arith.constant 0 : index
    %33 = vector.load %arg6[%c64, %c0_21] : memref<1152x64xf32, #tpu.memory_space<vmem>>, vector<32x64xf32>
    tpu.vector_store %arg6[%c64, %c0_21], %32 {strides = array<i32>} : memref<1152x64xf32, #tpu.memory_space<vmem>>, vector<32x64xf32>,
    %c216 = arith.constant 216 : index
    %c0_22 = arith.constant 0 : index
    %34 = vector.load %arg6[%c216, %c0_22] : memref<1152x64xf32, #tpu.memory_space<vmem>>, vector<32x64xf32>
    %c252 = arith.constant 252 : index
    %c0_23 = arith.constant 0 : index
    %35 = vector.load %arg6[%c252, %c0_23] : memref<1152x64xf32, #tpu.memory_space<vmem>>, vector<32x64xf32>
    %36 = arith.maximumf %34, %35 : vector<32x64xf32>
    %37 = vector.shape_cast %6 : vector<64xf32> to vector<1x64xf32>
    %38 = vector.broadcast %37 : vector<1x64xf32> to vector<32x64xf32>
    %39 = arith.addf %36, %38 : vector<32x64xf32>
    %cst_24 = arith.constant 0.000000e+00 : f32
    %40 = vector.broadcast %cst_24 : f32 to vector<32x64xf32>
    %41 = arith.maximumf %39, %40 : vector<32x64xf32>
    %c96 = arith.constant 96 : index
    %c0_25 = arith.constant 0 : index
    %42 = vector.load %arg6[%c96, %c0_25] : memref<1152x64xf32, #tpu.memory_space<vmem>>, vector<32x64xf32>
    tpu.vector_store %arg6[%c96, %c0_25], %41 {strides = array<i32>} : memref<1152x64xf32, #tpu.memory_space<vmem>>, vector<32x64xf32>,
    %c288 = arith.constant 288 : index
    %c0_26 = arith.constant 0 : index
    %43 = vector.load %arg6[%c288, %c0_26] : memref<1152x64xf32, #tpu.memory_space<vmem>>, vector<32x64xf32>
    %c324 = arith.constant 324 : index
    %c0_27 = arith.constant 0 : index
    %44 = vector.load %arg6[%c324, %c0_27] : memref<1152x64xf32, #tpu.memory_space<vmem>>, vector<32x64xf32>
    %45 = arith.maximumf %43, %44 : vector<32x64xf32>
    %46 = vector.shape_cast %6 : vector<64xf32> to vector<1x64xf32>
    %47 = vector.broadcast %46 : vector<1x64xf32> to vector<32x64xf32>
    %48 = arith.addf %45, %47 : vector<32x64xf32>
    %cst_28 = arith.constant 0.000000e+00 : f32
    %49 = vector.broadcast %cst_28 : f32 to vector<32x64xf32>
    %50 = arith.maximumf %48, %49 : vector<32x64xf32>
    %c128 = arith.constant 128 : index
    %c0_29 = arith.constant 0 : index
    %51 = vector.load %arg6[%c128, %c0_29] : memref<1152x64xf32, #tpu.memory_space<vmem>>, vector<32x64xf32>
    tpu.vector_store %arg6[%c128, %c0_29], %50 {strides = array<i32>} : memref<1152x64xf32, #tpu.memory_space<vmem>>, vector<32x64xf32>,
    %c360 = arith.constant 360 : index
    %c0_30 = arith.constant 0 : index
    %52 = vector.load %arg6[%c360, %c0_30] : memref<1152x64xf32, #tpu.memory_space<vmem>>, vector<32x64xf32>
    %c396 = arith.constant 396 : index
    %c0_31 = arith.constant 0 : index
    %53 = vector.load %arg6[%c396, %c0_31] : memref<1152x64xf32, #tpu.memory_space<vmem>>, vector<32x64xf32>
    %54 = arith.maximumf %52, %53 : vector<32x64xf32>
    %55 = vector.shape_cast %6 : vector<64xf32> to vector<1x64xf32>
    %56 = vector.broadcast %55 : vector<1x64xf32> to vector<32x64xf32>
    %57 = arith.addf %54, %56 : vector<32x64xf32>
    %cst_32 = arith.constant 0.000000e+00 : f32
    %58 = vector.broadcast %cst_32 : f32 to vector<32x64xf32>
    %59 = arith.maximumf %57, %58 : vector<32x64xf32>
    %c160 = arith.constant 160 : index
    %c0_33 = arith.constant 0 : index
    %60 = vector.load %arg6[%c160, %c0_33] : memref<1152x64xf32, #tpu.memory_space<vmem>>, vector<32x64xf32>
    tpu.vector_store %arg6[%c160, %c0_33], %59 {strides = array<i32>} : memref<1152x64xf32, #tpu.memory_space<vmem>>, vector<32x64xf32>,
    %c432 = arith.constant 432 : index
    %c0_34 = arith.constant 0 : index
    %61 = vector.load %arg6[%c432, %c0_34] : memref<1152x64xf32, #tpu.memory_space<vmem>>, vector<32x64xf32>
    %c468 = arith.constant 468 : index
    %c0_35 = arith.constant 0 : index
    %62 = vector.load %arg6[%c468, %c0_35] : memref<1152x64xf32, #tpu.memory_space<vmem>>, vector<32x64xf32>
    %63 = arith.maximumf %61, %62 : vector<32x64xf32>
    %64 = vector.shape_cast %6 : vector<64xf32> to vector<1x64xf32>
    %65 = vector.broadcast %64 : vector<1x64xf32> to vector<32x64xf32>
    %66 = arith.addf %63, %65 : vector<32x64xf32>
    %cst_36 = arith.constant 0.000000e+00 : f32
    %67 = vector.broadcast %cst_36 : f32 to vector<32x64xf32>
    %68 = arith.maximumf %66, %67 : vector<32x64xf32>
    %c192 = arith.constant 192 : index
    %c0_37 = arith.constant 0 : index
    %69 = vector.load %arg6[%c192, %c0_37] : memref<1152x64xf32, #tpu.memory_space<vmem>>, vector<32x64xf32>
    tpu.vector_store %arg6[%c192, %c0_37], %68 {strides = array<i32>} : memref<1152x64xf32, #tpu.memory_space<vmem>>, vector<32x64xf32>,
    %c504 = arith.constant 504 : index
    %c0_38 = arith.constant 0 : index
    %70 = vector.load %arg6[%c504, %c0_38] : memref<1152x64xf32, #tpu.memory_space<vmem>>, vector<32x64xf32>
    %c540 = arith.constant 540 : index
    %c0_39 = arith.constant 0 : index
    %71 = vector.load %arg6[%c540, %c0_39] : memref<1152x64xf32, #tpu.memory_space<vmem>>, vector<32x64xf32>
    %72 = arith.maximumf %70, %71 : vector<32x64xf32>
    %73 = vector.shape_cast %6 : vector<64xf32> to vector<1x64xf32>
    %74 = vector.broadcast %73 : vector<1x64xf32> to vector<32x64xf32>
    %75 = arith.addf %72, %74 : vector<32x64xf32>
    %cst_40 = arith.constant 0.000000e+00 : f32
    %76 = vector.broadcast %cst_40 : f32 to vector<32x64xf32>
    %77 = arith.maximumf %75, %76 : vector<32x64xf32>
    %c224 = arith.constant 224 : index
    %c0_41 = arith.constant 0 : index
    %78 = vector.load %arg6[%c224, %c0_41] : memref<1152x64xf32, #tpu.memory_space<vmem>>, vector<32x64xf32>
    tpu.vector_store %arg6[%c224, %c0_41], %77 {strides = array<i32>} : memref<1152x64xf32, #tpu.memory_space<vmem>>, vector<32x64xf32>,
    %c576 = arith.constant 576 : index
    %c0_42 = arith.constant 0 : index
    %79 = vector.load %arg6[%c576, %c0_42] : memref<1152x64xf32, #tpu.memory_space<vmem>>, vector<32x64xf32>
    %c612 = arith.constant 612 : index
    %c0_43 = arith.constant 0 : index
    %80 = vector.load %arg6[%c612, %c0_43] : memref<1152x64xf32, #tpu.memory_space<vmem>>, vector<32x64xf32>
    %81 = arith.maximumf %79, %80 : vector<32x64xf32>
    %82 = vector.shape_cast %6 : vector<64xf32> to vector<1x64xf32>
    %83 = vector.broadcast %82 : vector<1x64xf32> to vector<32x64xf32>
    %84 = arith.addf %81, %83 : vector<32x64xf32>
    %cst_44 = arith.constant 0.000000e+00 : f32
    %85 = vector.broadcast %cst_44 : f32 to vector<32x64xf32>
    %86 = arith.maximumf %84, %85 : vector<32x64xf32>
    %c256 = arith.constant 256 : index
    %c0_45 = arith.constant 0 : index
    %87 = vector.load %arg6[%c256, %c0_45] : memref<1152x64xf32, #tpu.memory_space<vmem>>, vector<32x64xf32>
    tpu.vector_store %arg6[%c256, %c0_45], %86 {strides = array<i32>} : memref<1152x64xf32, #tpu.memory_space<vmem>>, vector<32x64xf32>,
    %c648 = arith.constant 648 : index
    %c0_46 = arith.constant 0 : index
    %88 = vector.load %arg6[%c648, %c0_46] : memref<1152x64xf32, #tpu.memory_space<vmem>>, vector<32x64xf32>
    %c684 = arith.constant 684 : index
    %c0_47 = arith.constant 0 : index
    %89 = vector.load %arg6[%c684, %c0_47] : memref<1152x64xf32, #tpu.memory_space<vmem>>, vector<32x64xf32>
    %90 = arith.maximumf %88, %89 : vector<32x64xf32>
    %91 = vector.shape_cast %6 : vector<64xf32> to vector<1x64xf32>
    %92 = vector.broadcast %91 : vector<1x64xf32> to vector<32x64xf32>
    %93 = arith.addf %90, %92 : vector<32x64xf32>
    %cst_48 = arith.constant 0.000000e+00 : f32
    %94 = vector.broadcast %cst_48 : f32 to vector<32x64xf32>
    %95 = arith.maximumf %93, %94 : vector<32x64xf32>
    %c288_49 = arith.constant 288 : index
    %c0_50 = arith.constant 0 : index
    %96 = vector.load %arg6[%c288_49, %c0_50] : memref<1152x64xf32, #tpu.memory_space<vmem>>, vector<32x64xf32>
    tpu.vector_store %arg6[%c288_49, %c0_50], %95 {strides = array<i32>} : memref<1152x64xf32, #tpu.memory_space<vmem>>, vector<32x64xf32>,
    %c720 = arith.constant 720 : index
    %c0_51 = arith.constant 0 : index
    %97 = vector.load %arg6[%c720, %c0_51] : memref<1152x64xf32, #tpu.memory_space<vmem>>, vector<32x64xf32>
    %c756 = arith.constant 756 : index
    %c0_52 = arith.constant 0 : index
    %98 = vector.load %arg6[%c756, %c0_52] : memref<1152x64xf32, #tpu.memory_space<vmem>>, vector<32x64xf32>
    %99 = arith.maximumf %97, %98 : vector<32x64xf32>
    %100 = vector.shape_cast %6 : vector<64xf32> to vector<1x64xf32>
    %101 = vector.broadcast %100 : vector<1x64xf32> to vector<32x64xf32>
    %102 = arith.addf %99, %101 : vector<32x64xf32>
    %cst_53 = arith.constant 0.000000e+00 : f32
    %103 = vector.broadcast %cst_53 : f32 to vector<32x64xf32>
    %104 = arith.maximumf %102, %103 : vector<32x64xf32>
    %c320 = arith.constant 320 : index
    %c0_54 = arith.constant 0 : index
    %105 = vector.load %arg6[%c320, %c0_54] : memref<1152x64xf32, #tpu.memory_space<vmem>>, vector<32x64xf32>
    tpu.vector_store %arg6[%c320, %c0_54], %104 {strides = array<i32>} : memref<1152x64xf32, #tpu.memory_space<vmem>>, vector<32x64xf32>,
    %c792 = arith.constant 792 : index
    %c0_55 = arith.constant 0 : index
    %106 = vector.load %arg6[%c792, %c0_55] : memref<1152x64xf32, #tpu.memory_space<vmem>>, vector<32x64xf32>
    %c828 = arith.constant 828 : index
    %c0_56 = arith.constant 0 : index
    %107 = vector.load %arg6[%c828, %c0_56] : memref<1152x64xf32, #tpu.memory_space<vmem>>, vector<32x64xf32>
    %108 = arith.maximumf %106, %107 : vector<32x64xf32>
    %109 = vector.shape_cast %6 : vector<64xf32> to vector<1x64xf32>
    %110 = vector.broadcast %109 : vector<1x64xf32> to vector<32x64xf32>
    %111 = arith.addf %108, %110 : vector<32x64xf32>
    %cst_57 = arith.constant 0.000000e+00 : f32
    %112 = vector.broadcast %cst_57 : f32 to vector<32x64xf32>
    %113 = arith.maximumf %111, %112 : vector<32x64xf32>
    %c352 = arith.constant 352 : index
    %c0_58 = arith.constant 0 : index
    %114 = vector.load %arg6[%c352, %c0_58] : memref<1152x64xf32, #tpu.memory_space<vmem>>, vector<32x64xf32>
    tpu.vector_store %arg6[%c352, %c0_58], %113 {strides = array<i32>} : memref<1152x64xf32, #tpu.memory_space<vmem>>, vector<32x64xf32>,
    %c864 = arith.constant 864 : index
    %c0_59 = arith.constant 0 : index
    %115 = vector.load %arg6[%c864, %c0_59] : memref<1152x64xf32, #tpu.memory_space<vmem>>, vector<32x64xf32>
    %c900 = arith.constant 900 : index
    %c0_60 = arith.constant 0 : index
    %116 = vector.load %arg6[%c900, %c0_60] : memref<1152x64xf32, #tpu.memory_space<vmem>>, vector<32x64xf32>
    %117 = arith.maximumf %115, %116 : vector<32x64xf32>
    %118 = vector.shape_cast %6 : vector<64xf32> to vector<1x64xf32>
    %119 = vector.broadcast %118 : vector<1x64xf32> to vector<32x64xf32>
    %120 = arith.addf %117, %119 : vector<32x64xf32>
    %cst_61 = arith.constant 0.000000e+00 : f32
    %121 = vector.broadcast %cst_61 : f32 to vector<32x64xf32>
    %122 = arith.maximumf %120, %121 : vector<32x64xf32>
    %c384 = arith.constant 384 : index
    %c0_62 = arith.constant 0 : index
    %123 = vector.load %arg6[%c384, %c0_62] : memref<1152x64xf32, #tpu.memory_space<vmem>>, vector<32x64xf32>
    tpu.vector_store %arg6[%c384, %c0_62], %122 {strides = array<i32>} : memref<1152x64xf32, #tpu.memory_space<vmem>>, vector<32x64xf32>,
    %c936 = arith.constant 936 : index
    %c0_63 = arith.constant 0 : index
    %124 = vector.load %arg6[%c936, %c0_63] : memref<1152x64xf32, #tpu.memory_space<vmem>>, vector<32x64xf32>
    %c972 = arith.constant 972 : index
    %c0_64 = arith.constant 0 : index
    %125 = vector.load %arg6[%c972, %c0_64] : memref<1152x64xf32, #tpu.memory_space<vmem>>, vector<32x64xf32>
    %126 = arith.maximumf %124, %125 : vector<32x64xf32>
    %127 = vector.shape_cast %6 : vector<64xf32> to vector<1x64xf32>
    %128 = vector.broadcast %127 : vector<1x64xf32> to vector<32x64xf32>
    %129 = arith.addf %126, %128 : vector<32x64xf32>
    %cst_65 = arith.constant 0.000000e+00 : f32
    %130 = vector.broadcast %cst_65 : f32 to vector<32x64xf32>
    %131 = arith.maximumf %129, %130 : vector<32x64xf32>
    %c416 = arith.constant 416 : index
    %c0_66 = arith.constant 0 : index
    %132 = vector.load %arg6[%c416, %c0_66] : memref<1152x64xf32, #tpu.memory_space<vmem>>, vector<32x64xf32>
    tpu.vector_store %arg6[%c416, %c0_66], %131 {strides = array<i32>} : memref<1152x64xf32, #tpu.memory_space<vmem>>, vector<32x64xf32>,
    %c1008 = arith.constant 1008 : index
    %c0_67 = arith.constant 0 : index
    %133 = vector.load %arg6[%c1008, %c0_67] : memref<1152x64xf32, #tpu.memory_space<vmem>>, vector<32x64xf32>
    %c1044 = arith.constant 1044 : index
    %c0_68 = arith.constant 0 : index
    %134 = vector.load %arg6[%c1044, %c0_68] : memref<1152x64xf32, #tpu.memory_space<vmem>>, vector<32x64xf32>
    %135 = arith.maximumf %133, %134 : vector<32x64xf32>
    %136 = vector.shape_cast %6 : vector<64xf32> to vector<1x64xf32>
    %137 = vector.broadcast %136 : vector<1x64xf32> to vector<32x64xf32>
    %138 = arith.addf %135, %137 : vector<32x64xf32>
    %cst_69 = arith.constant 0.000000e+00 : f32
    %139 = vector.broadcast %cst_69 : f32 to vector<32x64xf32>
    %140 = arith.maximumf %138, %139 : vector<32x64xf32>
    %c448 = arith.constant 448 : index
    %c0_70 = arith.constant 0 : index
    %141 = vector.load %arg6[%c448, %c0_70] : memref<1152x64xf32, #tpu.memory_space<vmem>>, vector<32x64xf32>
    tpu.vector_store %arg6[%c448, %c0_70], %140 {strides = array<i32>} : memref<1152x64xf32, #tpu.memory_space<vmem>>, vector<32x64xf32>,
    %c1080 = arith.constant 1080 : index
    %c0_71 = arith.constant 0 : index
    %142 = vector.load %arg6[%c1080, %c0_71] : memref<1152x64xf32, #tpu.memory_space<vmem>>, vector<32x64xf32>
    %c1116 = arith.constant 1116 : index
    %c0_72 = arith.constant 0 : index
    %143 = vector.load %arg6[%c1116, %c0_72] : memref<1152x64xf32, #tpu.memory_space<vmem>>, vector<32x64xf32>
    %144 = arith.maximumf %142, %143 : vector<32x64xf32>
    %145 = vector.shape_cast %6 : vector<64xf32> to vector<1x64xf32>
    %146 = vector.broadcast %145 : vector<1x64xf32> to vector<32x64xf32>
    %147 = arith.addf %144, %146 : vector<32x64xf32>
    %cst_73 = arith.constant 0.000000e+00 : f32
    %148 = vector.broadcast %cst_73 : f32 to vector<32x64xf32>
    %149 = arith.maximumf %147, %148 : vector<32x64xf32>
    %c480 = arith.constant 480 : index
    %c0_74 = arith.constant 0 : index
    %150 = vector.load %arg6[%c480, %c0_74] : memref<1152x64xf32, #tpu.memory_space<vmem>>, vector<32x64xf32>
    tpu.vector_store %arg6[%c480, %c0_74], %149 {strides = array<i32>} : memref<1152x64xf32, #tpu.memory_space<vmem>>, vector<32x64xf32>,
    %c0_75 = arith.constant 0 : index
    %c0_76 = arith.constant 0 : index
    %151 = tpu.strided_load %arg6[%c0_75, %c0_76] {strides = array<i32: 2, 1>} : memref<1152x64xf32, #tpu.memory_space<vmem>>, vector<256x64xf32>
    %c1 = arith.constant 1 : index
    %c0_77 = arith.constant 0 : index
    %152 = tpu.strided_load %arg6[%c1, %c0_77] {strides = array<i32: 2, 1>} : memref<1152x64xf32, #tpu.memory_space<vmem>>, vector<256x64xf32>
    %153 = arith.maximumf %151, %152 : vector<256x64xf32>
    %154 = arith.truncf %153 : vector<256x64xf32> to vector<256x64xbf16>
    %c0_78 = arith.constant 0 : index
    %c0_79 = arith.constant 0 : index
    %c0_80 = arith.constant 0 : index
    %155 = vector.load %arg5[%c0_78, %c0_79, %c0_80] : memref<1x256x64xbf16, #tpu.memory_space<vmem>>, vector<1x256x64xbf16>
    %156 = vector.shape_cast %155 : vector<1x256x64xbf16> to vector<256x64xbf16>
    %157 = vector.shape_cast %154 : vector<256x64xbf16> to vector<1x256x64xbf16>
    tpu.vector_store %arg5[%c0_78, %c0_79, %c0_80], %157 {strides = array<i32>} : memref<1x256x64xbf16, #tpu.memory_space<vmem>>, vector<1x256x64xbf16>,
    return
  }
  func.func @transform_0(%arg0: i32, %arg1: i32) -> (i32, i32, i32) {
    %c0_i32 = arith.constant 0 : i32
    %c0_i32_0 = arith.constant 0 : i32
    %c0_i32_1 = arith.constant 0 : i32
    return %arg0, %c0_i32, %c0_i32_0 : i32, i32, i32
  }
  func.func @transform_1(%arg0: i32, %arg1: i32) -> (i32, i32) {
    %c0_i32 = arith.constant 0 : i32
    %c0_i32_0 = arith.constant 0 : i32
    return %c0_i32, %arg1 : i32, i32
  }
  func.func @transform_2(%arg0: i32, %arg1: i32) -> (i32, i32) {
    %c0_i32 = arith.constant 0 : i32
    %c0_i32_0 = arith.constant 0 : i32
    return %c0_i32, %arg1 : i32, i32
  }
  func.func @transform_3(%arg0: i32, %arg1: i32) -> (i32, i32, i32) {
    %c0_i32 = arith.constant 0 : i32
    %c0_i32_0 = arith.constant 0 : i32
    return %arg0, %c0_i32, %arg1 : i32, i32, i32
  }
}

</mosaic_0001>

<bundles_post_ra>
// kernel: tpu_custom_call.1
= control target key start
LH: loop header
LB: loop body
LE: loop exit
PB: predicated region body
PF: predicated region fallthrough
CT: control target
= control target key end

     0   :  { %s3225_s12 = smov 0   ;;  %s3227_s13 = smov 0   ;;  %s3948_s0 = inlined_call_operand.vmem [shape: f32[2,1152,32], index: 0, kind: input, shape index: {}]   ;;  %s3949_s1 = inlined_call_operand.vmem [shape: f32[32,64], index: 1, kind: input, shape index: {}]   ;;  %s3950_s2 = inlined_call_operand.vmem [shape: f32[1,64], index: 2, kind: input, shape index: {}]   ;;  %s3951_s3 = inlined_call_operand.vmem [shape: bf16[2,256,64], index: 3, kind: output, shape index: {}]  }
   0x1   :  { %s3229_s14 = smov 0  }
   0x2 LB: > { %s25_s15 = sadd.s32 1, %s3199_s13  ;;  %p2555_p0 = scmp.ge.s32.totalorder %s3203_s14, 1  ;;  %s3203_s14 = sphi %s3229_s14, %s13_s14   ;;  %s3199_s13 = sphi %s3227_s13, %s3953_s13   ;;  %s3195_s12 = sphi %s3225_s12, %s3952_s12  }
   0x3   : > { %p27_p1 = scmp.ge.s32.totalorder %s25_s15, 2  ;;  %p168_p2 = scmp.lt.s32.totalorder %s3203_s14, 3 }
   0x5   : > { %s3955_s15 = smov (%p27_p1, %s25_s15), 0  ;;  %p169_p3 = pnand %p2555_p0, %p168_p2 }
   0x6   : > { %v366_v0 = vld [vmem:[%s3949_s1] sm:$0xff] (!%p169_p3)  ;;  %v367_v1 = vld [vmem:[%s3949_s1 + $0x8] sm:$0xff] (!%p169_p3)  ;;  %v368_v2 = vld [vmem:[%s3949_s1 + $0x10] sm:$0xff] (!%p169_p3)  ;;  %p202_p4 = scmp.lt.s32.totalorder (!%p169_p3), %s3195_s12, 1  ;;  %vm370_vm0 = vcmask (!%p169_p3), 261120   ;;  %vm1588_vm1 = vcmask (!%p169_p3), 523264  }
   0x7   : > { %172 = sbr.rel (%p169_p3) target bundleno = 412 (0x19c), region = 32  ;;  %v3143_v3 = vpack.c.bf16 (!%p169_p3), %v367_v1, %v366_v0  ;;  %v369_v4 = vld [vmem:[%s3949_s1 + $0x18] sm:$0xff] (!%p169_p3)  ;;  %vm2411_vm2 = vcmask (!%p169_p3), 519168  }
   0x8   : > { %v3147_v5 = vpack.c.bf16 (!%p169_p3), %v369_v4, %v368_v2 }
   0x9   : > { %3144 = vmatprep.subr.bf16.mxu0 (!%p169_p3), %v3143_v3  ;;  %3151 = vmatprep.subr.bf16.mxu1 (!%p169_p3), %v3143_v3 }
   0xa   : > { %3146 = vmatpush3.bf16.msra.mxu0 (!%p169_p3), %v3143_v3  ;;  %3153 = vmatpush3.bf16.msra.mxu1 (!%p169_p3), %v3143_v3 }
   0xb   : > { %3148 = vmatprep.subr.bf16.mxu0 (!%p169_p3), %v3147_v5  ;;  %3152 = vmatprep.subr.bf16.mxu1 (!%p169_p3), %v3147_v5 }
   0xe   : > { %s3957_s12 = smov (!%p202_p4, %s3195_s12), 1  ;;  %3150 = vmatpush3.bf16.msra.mxu0 %v3147_v5  ;;  %3154 = vmatpush3.bf16.msra.mxu1 %v3147_v5 }
   0xf   : > { %s3155_s24 = smul.u32 1152, %s3957_s12  ;;  %s2738_s30 = sshll.u32 %s3957_s12, 7 }
  0x10   : > { %s3604_s6 = scalar_lea.vmem %s3951_s3, %s2738_s30 }
  0x11   : > { %s3261_s27 = scalar_lea.vmem %s3948_s0, %s3155_s24 }
  0x12   : > { %v222_v6 = vld [vmem:[%s3261_s27] sm:$0xff]  ;;  %v223_v8 = vld [vmem:[%s3261_s27 + $0x8] sm:$0xff]  ;;  %v224_v10 = vld [vmem:[%s3261_s27 + $0x10] sm:$0xff] }
  0x13   : > { %v294_v7 = vld [vmem:[%s3261_s27 + $0x240] sm:$0xff]  ;;  %v295_v9 = vld [vmem:[%s3261_s27 + $0x248] sm:$0xff]  ;;  %2927 = vmatprep.mubr.msk.f32.mxu0 %vm370_vm0, %v222_v6  ;;  %v296_v11 = vld [vmem:[%s3261_s27 + $0x250] sm:$0xff] }
  0x14   : > { %3035 = vmatprep.mubr.msk.f32.mxu1 %vm370_vm0, %v294_v7  ;;  %2928 = vmatmul.mubr.msk.f32.vlgmr.msra.gmra.mrb[0].mxu0 %vm370_vm0, %v223_v8  ;;  %v225_v12 = vld [vmem:[%s3261_s27 + $0x18] sm:$0xff]  ;;  %v226_v14 = vld [vmem:[%s3261_s27 + $0x20] sm:$0xff]  ;;  %v227_v16 = vld [vmem:[%s3261_s27 + $0x28] sm:$0xff] }
  0x15   : > { %3036 = vmatmul.mubr.msk.f32.vlgmr.msra.gmra.mrb[0].mxu1 %vm370_vm0, %v295_v9  ;;  %2930 = vmatprep.mubr.msk.f32.mxu0 %vm370_vm0, %v224_v10  ;;  %v297_v13 = vld [vmem:[%s3261_s27 + $0x258] sm:$0xff]  ;;  %v298_v15 = vld [vmem:[%s3261_s27 + $0x260] sm:$0xff]  ;;  %v299_v17 = vld [vmem:[%s3261_s27 + $0x268] sm:$0xff] }
  0x16   : > { %3038 = vmatprep.mubr.msk.f32.mxu1 %vm370_vm0, %v296_v11  ;;  %v228_v18 = vld [vmem:[%s3261_s27 + $0x30] sm:$0xff]  ;;  %v229_v20 = vld [vmem:[%s3261_s27 + $0x38] sm:$0xff]  ;;  %v230_v22 = vld [vmem:[%s3261_s27 + $0x40] sm:$0xff] }
  0x17   : > { %v300_v19 = vld [vmem:[%s3261_s27 + $0x270] sm:$0xff]  ;;  %v301_v21 = vld [vmem:[%s3261_s27 + $0x278] sm:$0xff]  ;;  %v302_v23 = vld [vmem:[%s3261_s27 + $0x280] sm:$0xff] }
  0x18   : > { %2931 = vmatmul.mubr.msk.f32.gmra.mrb[2].mxu0 %vm370_vm0, %v225_v12  ;;  %v231_v24 = vld [vmem:[%s3261_s27 + $0x48] sm:$0xff]  ;;  %v232_v26 = vld [vmem:[%s3261_s27 + $0x50] sm:$0xff]  ;;  %v233_v28 = vld [vmem:[%s3261_s27 + $0x58] sm:$0xff] }
  0x19   : > { %3039 = vmatmul.mubr.msk.f32.gmra.mrb[2].mxu1 %vm370_vm0, %v297_v13  ;;  %2933 = vmatprep.mubr.msk.f32.mxu0 %vm370_vm0, %v226_v14  ;;  %v303_v25 = vld [vmem:[%s3261_s27 + $0x288] sm:$0xff]  ;;  %v304_v27 = vld [vmem:[%s3261_s27 + $0x290] sm:$0xff]  ;;  %v305_v29 = vld [vmem:[%s3261_s27 + $0x298] sm:$0xff] }
  0x1a   : > { %3041 = vmatprep.mubr.msk.f32.mxu1 %vm370_vm0, %v298_v15  ;;  %v234_v30 = vld [vmem:[%s3261_s27 + $0x60] sm:$0xff]  ;;  %v235_v32 = vld [vmem:[%s3261_s27 + $0x68] sm:$0xff]  ;;  %v236_v34 = vld [vmem:[%s3261_s27 + $0x70] sm:$0xff] }
  0x1b   : > { %v306_v31 = vld [vmem:[%s3261_s27 + $0x2a0] sm:$0xff]  ;;  %v307_v33 = vld [vmem:[%s3261_s27 + $0x2a8] sm:$0xff]  ;;  %v308_v35 = vld [vmem:[%s3261_s27 + $0x2b0] sm:$0xff] }
  0x1c   : > { %2934 = vmatmul.mubr.msk.f32.gmra.mrb[4].mxu0 %vm370_vm0, %v227_v16  ;;  %v237_v36 = vld [vmem:[%s3261_s27 + $0x78] sm:$0xff]  ;;  %v238_v38 = vld [vmem:[%s3261_s27 + $0x80] sm:$0xff]  ;;  %v239_v40 = vld [vmem:[%s3261_s27 + $0x88] sm:$0xff] }
  0x1d   : > { %3042 = vmatmul.mubr.msk.f32.gmra.mrb[4].mxu1 %vm370_vm0, %v299_v17  ;;  %2936 = vmatprep.mubr.msk.f32.mxu0 %vm370_vm0, %v228_v18  ;;  %v309_v37 = vld [vmem:[%s3261_s27 + $0x2b8] sm:$0xff]  ;;  %v310_v39 = vld [vmem:[%s3261_s27 + $0x2c0] sm:$0xff]  ;;  %v311_v41 = vld [vmem:[%s3261_s27 + $0x2c8] sm:$0xff] }
  0x1e   : > { %3044 = vmatprep.mubr.msk.f32.mxu1 %vm370_vm0, %v300_v19  ;;  %v240_v42 = vld [vmem:[%s3261_s27 + $0x90] sm:$0xff]  ;;  %v241_v44 = vld [vmem:[%s3261_s27 + $0x98] sm:$0xff]  ;;  %v242_v46 = vld [vmem:[%s3261_s27 + $0xa0] sm:$0xff] }
  0x1f   : > { %v312_v43 = vld [vmem:[%s3261_s27 + $0x2d0] sm:$0xff]  ;;  %v313_v45 = vld [vmem:[%s3261_s27 + $0x2d8] sm:$0xff]  ;;  %v314_v47 = vld [vmem:[%s3261_s27 + $0x2e0] sm:$0xff] }
  0x20   : > { %2937 = vmatmul.mubr.msk.f32.gmra.mrb[6].mxu0 %vm370_vm0, %v229_v20  ;;  %v243_v48 = vld [vmem:[%s3261_s27 + $0xa8] sm:$0xff]  ;;  %v244_v50 = vld [vmem:[%s3261_s27 + $0xb0] sm:$0xff]  ;;  %v245_v52 = vld [vmem:[%s3261_s27 + $0xb8] sm:$0xff] }
  0x21   : > { %3045 = vmatmul.mubr.msk.f32.gmra.mrb[6].mxu1 %vm370_vm0, %v301_v21  ;;  %2939 = vmatprep.mubr.msk.f32.mxu0 %vm370_vm0, %v230_v22  ;;  %v315_v49 = vld [vmem:[%s3261_s27 + $0x2e8] sm:$0xff]  ;;  %v316_v51 = vld [vmem:[%s3261_s27 + $0x2f0] sm:$0xff]  ;;  %v317_v53 = vld [vmem:[%s3261_s27 + $0x2f8] sm:$0xff] }
  0x22   : > { %3047 = vmatprep.mubr.msk.f32.mxu1 %vm370_vm0, %v302_v23  ;;  %v246_v54 = vld [vmem:[%s3261_s27 + $0xc0] sm:$0xff]  ;;  %v247_v56 = vld [vmem:[%s3261_s27 + $0xc8] sm:$0xff]  ;;  %v248_v58 = vld [vmem:[%s3261_s27 + $0xd0] sm:$0xff] }
  0x23   : > { %v318_v55 = vld [vmem:[%s3261_s27 + $0x300] sm:$0xff]  ;;  %v319_v57 = vld [vmem:[%s3261_s27 + $0x308] sm:$0xff]  ;;  %v320_v59 = vld [vmem:[%s3261_s27 + $0x310] sm:$0xff] }
  0x24   : > { %2940 = vmatmul.mubr.msk.f32.gmra.mrb[8].mxu0 %vm370_vm0, %v231_v24  ;;  %v249_v60 = vld [vmem:[%s3261_s27 + $0xd8] sm:$0xff]  ;;  %v250_v62 = vld [vmem:[%s3261_s27 + $0xe0] sm:$0xff]  ;;  %v251_v0 = vld [vmem:[%s3261_s27 + $0xe8] sm:$0xff] }
  0x25   : > { %3048 = vmatmul.mubr.msk.f32.gmra.mrb[8].mxu1 %vm370_vm0, %v303_v25  ;;  %2942 = vmatprep.mubr.msk.f32.mxu0 %vm370_vm0, %v232_v26  ;;  %v321_v61 = vld [vmem:[%s3261_s27 + $0x318] sm:$0xff]  ;;  %v322_v63 = vld [vmem:[%s3261_s27 + $0x320] sm:$0xff]  ;;  %v323_v1 = vld [vmem:[%s3261_s27 + $0x328] sm:$0xff] }
  0x26   : > { %3050 = vmatprep.mubr.msk.f32.mxu1 %vm370_vm0, %v304_v27  ;;  %v252_v2 = vld [vmem:[%s3261_s27 + $0xf0] sm:$0xff]  ;;  %v253_v4 = vld [vmem:[%s3261_s27 + $0xf8] sm:$0xff]  ;;  %v254_v6 = vld [vmem:[%s3261_s27 + $0x100] sm:$0xff] }
  0x27   : > { %v324_v3 = vld [vmem:[%s3261_s27 + $0x330] sm:$0xff]  ;;  %v325_v5 = vld [vmem:[%s3261_s27 + $0x338] sm:$0xff]  ;;  %v326_v7 = vld [vmem:[%s3261_s27 + $0x340] sm:$0xff] }
  0x28   : > { %2943 = vmatmul.mubr.msk.f32.gmra.mrb[10].mxu0 %vm370_vm0, %v233_v28  ;;  %v255_v8 = vld [vmem:[%s3261_s27 + $0x108] sm:$0xff]  ;;  %v256_v10 = vld [vmem:[%s3261_s27 + $0x110] sm:$0xff]  ;;  %v257_v12 = vld [vmem:[%s3261_s27 + $0x118] sm:$0xff] }
  0x29   : > { %3051 = vmatmul.mubr.msk.f32.gmra.mrb[10].mxu1 %vm370_vm0, %v305_v29  ;;  %2945 = vmatprep.mubr.msk.f32.mxu0 %vm370_vm0, %v234_v30  ;;  %v327_v9 = vld [vmem:[%s3261_s27 + $0x348] sm:$0xff]  ;;  %v328_v11 = vld [vmem:[%s3261_s27 + $0x350] sm:$0xff]  ;;  %v329_v13 = vld [vmem:[%s3261_s27 + $0x358] sm:$0xff] }
  0x2a   : > { %3053 = vmatprep.mubr.msk.f32.mxu1 %vm370_vm0, %v306_v31  ;;  %v258_v14 = vld [vmem:[%s3261_s27 + $0x120] sm:$0xff]  ;;  %v259_v16 = vld [vmem:[%s3261_s27 + $0x128] sm:$0xff]  ;;  %v260_v18 = vld [vmem:[%s3261_s27 + $0x130] sm:$0xff] }
  0x2b   : > { %v330_v15 = vld [vmem:[%s3261_s27 + $0x360] sm:$0xff]  ;;  %v331_v17 = vld [vmem:[%s3261_s27 + $0x368] sm:$0xff]  ;;  %v332_v19 = vld [vmem:[%s3261_s27 + $0x370] sm:$0xff] }
  0x2c   : > { %2946 = vmatmul.mubr.msk.f32.gmra.mrb[12].mxu0 %vm370_vm0, %v235_v32  ;;  %v261_v20 = vld [vmem:[%s3261_s27 + $0x138] sm:$0xff]  ;;  %v262_v22 = vld [vmem:[%s3261_s27 + $0x140] sm:$0xff]  ;;  %v263_v24 = vld [vmem:[%s3261_s27 + $0x148] sm:$0xff] }
  0x2d   : > { %3054 = vmatmul.mubr.msk.f32.gmra.mrb[12].mxu1 %vm370_vm0, %v307_v33  ;;  %2948 = vmatprep.mubr.msk.f32.mxu0 %vm370_vm0, %v236_v34  ;;  %v333_v21 = vld [vmem:[%s3261_s27 + $0x378] sm:$0xff]  ;;  %v334_v23 = vld [vmem:[%s3261_s27 + $0x380] sm:$0xff]  ;;  %v335_v25 = vld [vmem:[%s3261_s27 + $0x388] sm:$0xff] }
  0x2e   : > { %3056 = vmatprep.mubr.msk.f32.mxu1 %vm370_vm0, %v308_v35  ;;  %v264_v26 = vld [vmem:[%s3261_s27 + $0x150] sm:$0xff]  ;;  %v265_v28 = vld [vmem:[%s3261_s27 + $0x158] sm:$0xff]  ;;  %v266_v30 = vld [vmem:[%s3261_s27 + $0x160] sm:$0xff] }
  0x2f   : > { %v336_v27 = vld [vmem:[%s3261_s27 + $0x390] sm:$0xff]  ;;  %v337_v29 = vld [vmem:[%s3261_s27 + $0x398] sm:$0xff]  ;;  %v338_v31 = vld [vmem:[%s3261_s27 + $0x3a0] sm:$0xff] }
  0x30   : > { %2949 = vmatmul.mubr.msk.f32.gmra.mrb[14].mxu0 %vm370_vm0, %v237_v36  ;;  %v267_v32 = vld [vmem:[%s3261_s27 + $0x168] sm:$0xff]  ;;  %v268_v34 = vld [vmem:[%s3261_s27 + $0x170] sm:$0xff]  ;;  %v269_v36 = vld [vmem:[%s3261_s27 + $0x178] sm:$0xff] }
  0x31   : > { %3057 = vmatmul.mubr.msk.f32.gmra.mrb[14].mxu1 %vm370_vm0, %v309_v37  ;;  %2951 = vmatprep.mubr.msk.f32.mxu0 %vm370_vm0, %v238_v38  ;;  %v339_v33 = vld [vmem:[%s3261_s27 + $0x3a8] sm:$0xff]  ;;  %v340_v35 = vld [vmem:[%s3261_s27 + $0x3b0] sm:$0xff]  ;;  %v341_v37 = vld [vmem:[%s3261_s27 + $0x3b8] sm:$0xff] }
  0x32   : > { %3059 = vmatprep.mubr.msk.f32.mxu1 %vm370_vm0, %v310_v39  ;;  %v270_v38 = vld [vmem:[%s3261_s27 + $0x180] sm:$0xff] }
  0x33   : > { %v342_v39 = vld [vmem:[%s3261_s27 + $0x3c0] sm:$0xff] }
  0x34   : > { %2952 = vmatmul.mubr.msk.f32.gmra.mrb[16].mxu0 %vm370_vm0, %v239_v40  ;;  %v271_v40 = vld [vmem:[%s3261_s27 + $0x188] sm:$0xff] }
  0x35   : > { %3060 = vmatmul.mubr.msk.f32.gmra.mrb[16].mxu1 %vm370_vm0, %v311_v41  ;;  %2954 = vmatprep.mubr.msk.f32.mxu0 %vm370_vm0, %v240_v42  ;;  %v343_v41 = vld [vmem:[%s3261_s27 + $0x3c8] sm:$0xff]  ;;  %v272_v42 = vld [vmem:[%s3261_s27 + $0x190] sm:$0xff] }
  0x36   : > { %3062 = vmatprep.mubr.msk.f32.mxu1 %vm370_vm0, %v312_v43  ;;  %v344_v43 = vld [vmem:[%s3261_s27 + $0x3d0] sm:$0xff] }
  0x38   : > { %2955 = vmatmul.mubr.msk.f32.gmra.mrb[18].mxu0 %vm370_vm0, %v241_v44  ;;  %v273_v44 = vld [vmem:[%s3261_s27 + $0x198] sm:$0xff] }
  0x39   : > { %3063 = vmatmul.mubr.msk.f32.gmra.mrb[18].mxu1 %vm370_vm0, %v313_v45  ;;  %2957 = vmatprep.mubr.msk.f32.mxu0 %vm370_vm0, %v242_v46  ;;  %v345_v45 = vld [vmem:[%s3261_s27 + $0x3d8] sm:$0xff]  ;;  %v274_v46 = vld [vmem:[%s3261_s27 + $0x1a0] sm:$0xff] }
  0x3a   : > { %3065 = vmatprep.mubr.msk.f32.mxu1 %vm370_vm0, %v314_v47  ;;  %v346_v47 = vld [vmem:[%s3261_s27 + $0x3e0] sm:$0xff] }
  0x3c   : > { %2958 = vmatmul.mubr.msk.f32.gmra.mrb[20].mxu0 %vm370_vm0, %v243_v48  ;;  %v275_v48 = vld [vmem:[%s3261_s27 + $0x1a8] sm:$0xff] }
  0x3d   : > { %3066 = vmatmul.mubr.msk.f32.gmra.mrb[20].mxu1 %vm370_vm0, %v315_v49  ;;  %2960 = vmatprep.mubr.msk.f32.mxu0 %vm370_vm0, %v244_v50  ;;  %v347_v49 = vld [vmem:[%s3261_s27 + $0x3e8] sm:$0xff]  ;;  %v276_v50 = vld [vmem:[%s3261_s27 + $0x1b0] sm:$0xff] }
  0x3e   : > { %3068 = vmatprep.mubr.msk.f32.mxu1 %vm370_vm0, %v316_v51  ;;  %v348_v51 = vld [vmem:[%s3261_s27 + $0x3f0] sm:$0xff] }
  0x40   : > { %2961 = vmatmul.mubr.msk.f32.gmra.mrb[22].mxu0 %vm370_vm0, %v245_v52  ;;  %v277_v52 = vld [vmem:[%s3261_s27 + $0x1b8] sm:$0xff] }
  0x41   : > { %3069 = vmatmul.mubr.msk.f32.gmra.mrb[22].mxu1 %vm370_vm0, %v317_v53  ;;  %2963 = vmatprep.mubr.msk.f32.mxu0 %vm370_vm0, %v246_v54  ;;  %v349_v53 = vld [vmem:[%s3261_s27 + $0x3f8] sm:$0xff]  ;;  %v278_v54 = vld [vmem:[%s3261_s27 + $0x1c0] sm:$0xff] }
  0x42   : > { %3071 = vmatprep.mubr.msk.f32.mxu1 %vm370_vm0, %v318_v55  ;;  %v350_v55 = vld [vmem:[%s3261_s27 + $0x400] sm:$0xff] }
  0x44   : > { %2964 = vmatmul.mubr.msk.f32.gmra.mrb[24].mxu0 %vm370_vm0, %v247_v56  ;;  %v279_v56 = vld [vmem:[%s3261_s27 + $0x1c8] sm:$0xff] }
  0x45   : > { %3072 = vmatmul.mubr.msk.f32.gmra.mrb[24].mxu1 %vm370_vm0, %v319_v57  ;;  %2966 = vmatprep.mubr.msk.f32.mxu0 %vm370_vm0, %v248_v58  ;;  %v351_v57 = vld [vmem:[%s3261_s27 + $0x408] sm:$0xff]  ;;  %v280_v58 = vld [vmem:[%s3261_s27 + $0x1d0] sm:$0xff] }
  0x46   : > { %3074 = vmatprep.mubr.msk.f32.mxu1 %vm370_vm0, %v320_v59  ;;  %v352_v59 = vld [vmem:[%s3261_s27 + $0x410] sm:$0xff] }
  0x48   : > { %2967 = vmatmul.mubr.msk.f32.gmra.mrb[26].mxu0 %vm370_vm0, %v249_v60  ;;  %v281_v60 = vld [vmem:[%s3261_s27 + $0x1d8] sm:$0xff] }
  0x49   : > { %3075 = vmatmul.mubr.msk.f32.gmra.mrb[26].mxu1 %vm370_vm0, %v321_v61  ;;  %2969 = vmatprep.mubr.msk.f32.mxu0 %vm370_vm0, %v250_v62  ;;  %v353_v61 = vld [vmem:[%s3261_s27 + $0x418] sm:$0xff]  ;;  %v282_v62 = vld [vmem:[%s3261_s27 + $0x1e0] sm:$0xff] }
  0x4a   : > { %3077 = vmatprep.mubr.msk.f32.mxu1 %vm370_vm0, %v322_v63  ;;  %v354_v63 = vld [vmem:[%s3261_s27 + $0x420] sm:$0xff] }
  0x4c   : > { %2970 = vmatmul.mubr.msk.f32.gmra.mrb[28].mxu0 %vm370_vm0, %v251_v0  ;;  %v283_v0 = vld [vmem:[%s3261_s27 + $0x1e8] sm:$0xff] }
  0x4d   : > { %3078 = vmatmul.mubr.msk.f32.gmra.mrb[28].mxu1 %vm370_vm0, %v323_v1  ;;  %2972 = vmatprep.mubr.msk.f32.mxu0 %vm370_vm0, %v252_v2  ;;  %v355_v1 = vld [vmem:[%s3261_s27 + $0x428] sm:$0xff]  ;;  %v284_v2 = vld [vmem:[%s3261_s27 + $0x1f0] sm:$0xff] }
  0x4e   : > { %3080 = vmatprep.mubr.msk.f32.mxu1 %vm370_vm0, %v324_v3  ;;  %v356_v3 = vld [vmem:[%s3261_s27 + $0x430] sm:$0xff] }
  0x50   : > { %2973 = vmatmul.mubr.msk.f32.gmra.mrb[30].mxu0 %vm370_vm0, %v253_v4  ;;  %v285_v4 = vld [vmem:[%s3261_s27 + $0x1f8] sm:$0xff] }
  0x51   : > { %3081 = vmatmul.mubr.msk.f32.gmra.mrb[30].mxu1 %vm370_vm0, %v325_v5  ;;  %2975 = vmatprep.mubr.msk.f32.mxu0 %vm370_vm0, %v254_v6  ;;  %v357_v5 = vld [vmem:[%s3261_s27 + $0x438] sm:$0xff]  ;;  %v286_v6 = vld [vmem:[%s3261_s27 + $0x200] sm:$0xff] }
  0x52   : > { %3083 = vmatprep.mubr.msk.f32.mxu1 %vm370_vm0, %v326_v7  ;;  %v358_v7 = vld [vmem:[%s3261_s27 + $0x440] sm:$0xff] }
  0x54   : > { %2976 = vmatmul.mubr.msk.f32.gmra.mrb[32].mxu0 %vm370_vm0, %v255_v8  ;;  %v287_v8 = vld [vmem:[%s3261_s27 + $0x208] sm:$0xff] }
  0x55   : > { %3084 = vmatmul.mubr.msk.f32.gmra.mrb[32].mxu1 %vm370_vm0, %v327_v9  ;;  %2978 = vmatprep.mubr.msk.f32.mxu0 %vm370_vm0, %v256_v10  ;;  %v359_v9 = vld [vmem:[%s3261_s27 + $0x448] sm:$0xff]  ;;  %v288_v10 = vld [vmem:[%s3261_s27 + $0x210] sm:$0xff] }
  0x56   : > { %3086 = vmatprep.mubr.msk.f32.mxu1 %vm370_vm0, %v328_v11  ;;  %v360_v11 = vld [vmem:[%s3261_s27 + $0x450] sm:$0xff] }
  0x58   : > { %2979 = vmatmul.mubr.msk.f32.gmra.mrb[34].mxu0 %vm370_vm0, %v257_v12  ;;  %v289_v12 = vld [vmem:[%s3261_s27 + $0x218] sm:$0xff] }
  0x59   : > { %3087 = vmatmul.mubr.msk.f32.gmra.mrb[34].mxu1 %vm370_vm0, %v329_v13  ;;  %2981 = vmatprep.mubr.msk.f32.mxu0 %vm370_vm0, %v258_v14  ;;  %v361_v13 = vld [vmem:[%s3261_s27 + $0x458] sm:$0xff]  ;;  %v290_v14 = vld [vmem:[%s3261_s27 + $0x220] sm:$0xff] }
  0x5a   : > { %3089 = vmatprep.mubr.msk.f32.mxu1 %vm370_vm0, %v330_v15  ;;  %v362_v15 = vld [vmem:[%s3261_s27 + $0x460] sm:$0xff] }
  0x5c   : > { %2982 = vmatmul.mubr.msk.f32.gmra.mrb[36].mxu0 %vm370_vm0, %v259_v16  ;;  %v291_v16 = vld [vmem:[%s3261_s27 + $0x228] sm:$0xff] }
  0x5d   : > { %3090 = vmatmul.mubr.msk.f32.gmra.mrb[36].mxu1 %vm370_vm0, %v331_v17  ;;  %2984 = vmatprep.mubr.msk.f32.mxu0 %vm370_vm0, %v260_v18  ;;  %v363_v17 = vld [vmem:[%s3261_s27 + $0x468] sm:$0xff]  ;;  %v292_v18 = vld [vmem:[%s3261_s27 + $0x230] sm:$0xff] }
  0x5e   : > { %3092 = vmatprep.mubr.msk.f32.mxu1 %vm370_vm0, %v332_v19  ;;  %v364_v19 = vld [vmem:[%s3261_s27 + $0x470] sm:$0xff] }
  0x60   : > { %2985 = vmatmul.mubr.msk.f32.gmra.mrb[38].mxu0 %vm370_vm0, %v261_v20  ;;  %v293_v20 = vld [vmem:[%s3261_s27 + $0x238] sm:$0xff] }
  0x61   : > { %3093 = vmatmul.mubr.msk.f32.gmra.mrb[38].mxu1 %vm370_vm0, %v333_v21  ;;  %2987 = vmatprep.mubr.msk.f32.mxu0 %vm370_vm0, %v262_v22  ;;  %v365_v21 = vld [vmem:[%s3261_s27 + $0x478] sm:$0xff] }
  0x62   : > { %3095 = vmatprep.mubr.msk.f32.mxu1 %vm370_vm0, %v334_v23 }
  0x64   : > { %2988 = vmatmul.mubr.msk.f32.gmra.mrb[40].mxu0 %vm370_vm0, %v263_v24 }
  0x65   : > { %3096 = vmatmul.mubr.msk.f32.gmra.mrb[40].mxu1 %vm370_vm0, %v335_v25  ;;  %2990 = vmatprep.mubr.msk.f32.mxu0 %vm370_vm0, %v264_v26 }
  0x66   : > { %3098 = vmatprep.mubr.msk.f32.mxu1 %vm370_vm0, %v336_v27 }
  0x68   : > { %2991 = vmatmul.mubr.msk.f32.gmra.mrb[42].mxu0 %vm370_vm0, %v265_v28 }
  0x69   : > { %3099 = vmatmul.mubr.msk.f32.gmra.mrb[42].mxu1 %vm370_vm0, %v337_v29  ;;  %2993 = vmatprep.mubr.msk.f32.mxu0 %vm370_vm0, %v266_v30 }
  0x6a   : > { %3101 = vmatprep.mubr.msk.f32.mxu1 %vm370_vm0, %v338_v31 }
  0x6c   : > { %2994 = vmatmul.mubr.msk.f32.gmra.mrb[44].mxu0 %vm370_vm0, %v267_v32 }
  0x6d   : > { %3102 = vmatmul.mubr.msk.f32.gmra.mrb[44].mxu1 %vm370_vm0, %v339_v33  ;;  %2996 = vmatprep.mubr.msk.f32.mxu0 %vm370_vm0, %v268_v34 }
  0x6e   : > { %3104 = vmatprep.mubr.msk.f32.mxu1 %vm370_vm0, %v340_v35 }
  0x70   : > { %2997 = vmatmul.mubr.msk.f32.gmra.mrb[46].mxu0 %vm370_vm0, %v269_v36 }
  0x71   : > { %3105 = vmatmul.mubr.msk.f32.gmra.mrb[46].mxu1 %vm370_vm0, %v341_v37  ;;  %2999 = vmatprep.mubr.msk.f32.mxu0 %vm370_vm0, %v270_v38 }
  0x72   : > { %3107 = vmatprep.mubr.msk.f32.mxu1 %vm370_vm0, %v342_v39 }
  0x74   : > { %3000 = vmatmul.mubr.msk.f32.gmra.mrb[48].mxu0 %vm370_vm0, %v271_v40 }
  0x75   : > { %3108 = vmatmul.mubr.msk.f32.gmra.mrb[48].mxu1 %vm370_vm0, %v343_v41  ;;  %3002 = vmatprep.mubr.msk.f32.mxu0 %vm370_vm0, %v272_v42  ;;  %v3570_v41 = vld [vmem:[%s3950_s2] ss:$0 sm:$0xff] }
  0x76   : > { %3110 = vmatprep.mubr.msk.f32.mxu1 %vm370_vm0, %v344_v43 }
  0x78   : > { %3003 = vmatmul.mubr.msk.f32.gmra.mrb[50].mxu0 %vm370_vm0, %v273_v44 }
  0x79   : > { %3111 = vmatmul.mubr.msk.f32.gmra.mrb[50].mxu1 %vm370_vm0, %v345_v45  ;;  %3005 = vmatprep.mubr.msk.f32.mxu0 %vm370_vm0, %v274_v46 }
  0x7a   : > { %3113 = vmatprep.mubr.msk.f32.mxu1 %vm370_vm0, %v346_v47 }
  0x7c   : > { %3006 = vmatmul.mubr.msk.f32.gmra.mrb[52].mxu0 %vm370_vm0, %v275_v48 }
  0x7d   : > { %3114 = vmatmul.mubr.msk.f32.gmra.mrb[52].mxu1 %vm370_vm0, %v347_v49  ;;  %3008 = vmatprep.mubr.msk.f32.mxu0 %vm370_vm0, %v276_v50 }
  0x7e   : > { %3116 = vmatprep.mubr.msk.f32.mxu1 %vm370_vm0, %v348_v51 }
  0x80   : > { %3009 = vmatmul.mubr.msk.f32.gmra.mrb[54].mxu0 %vm370_vm0, %v277_v52 }
  0x81   : > { %3117 = vmatmul.mubr.msk.f32.gmra.mrb[54].mxu1 %vm370_vm0, %v349_v53  ;;  %3011 = vmatprep.mubr.msk.f32.mxu0 %vm370_vm0, %v278_v54 }
  0x82   : > { %3119 = vmatprep.mubr.msk.f32.mxu1 %vm370_vm0, %v350_v55 }
  0x84   : > { %3012 = vmatmul.mubr.msk.f32.gmra.mrb[56].mxu0 %vm370_vm0, %v279_v56 }
  0x85   : > { %3120 = vmatmul.mubr.msk.f32.gmra.mrb[56].mxu1 %vm370_vm0, %v351_v57  ;;  %3014 = vmatprep.mubr.msk.f32.mxu0 %vm370_vm0, %v280_v58 }
  0x86   : > { %3122 = vmatprep.mubr.msk.f32.mxu1 %vm370_vm0, %v352_v59 }
  0x88   : > { %3015 = vmatmul.mubr.msk.f32.gmra.mrb[58].mxu0 %vm370_vm0, %v281_v60 }
  0x89   : > { %3123 = vmatmul.mubr.msk.f32.gmra.mrb[58].mxu1 %vm370_vm0, %v353_v61  ;;  %3017 = vmatprep.mubr.msk.f32.mxu0 %vm370_vm0, %v282_v62 }
  0x8a   : > { %3125 = vmatprep.mubr.msk.f32.mxu1 %vm370_vm0, %v354_v63 }
  0x8c   : > { %3018 = vmatmul.mubr.msk.f32.gmra.mrb[60].mxu0 %vm370_vm0, %v283_v0 }
  0x8d   : > { %3126 = vmatmul.mubr.msk.f32.gmra.mrb[60].mxu1 %vm370_vm0, %v355_v1  ;;  %3020 = vmatprep.mubr.msk.f32.mxu0 %vm370_vm0, %v284_v2 }
  0x8e   : > { %3128 = vmatprep.mubr.msk.f32.mxu1 %vm370_vm0, %v356_v3 }
  0x90   : > { %3021 = vmatmul.mubr.msk.f32.gmra.mrb[62].mxu0 %vm370_vm0, %v285_v4 }
  0x91   : > { %3129 = vmatmul.mubr.msk.f32.gmra.mrb[62].mxu1 %vm370_vm0, %v357_v5  ;;  %3023 = vmatprep.mubr.msk.f32.mxu0 %vm370_vm0, %v286_v6 }
  0x92   : > { %3131 = vmatprep.mubr.msk.f32.mxu1 %vm370_vm0, %v358_v7 }
  0x94   : > { %3024 = vmatmul.mubr.msk.f32.gmra.mrb[64].mxu0 %vm370_vm0, %v287_v8 }
  0x95   : > { %3132 = vmatmul.mubr.msk.f32.gmra.mrb[64].mxu1 %vm370_vm0, %v359_v9  ;;  %3026 = vmatprep.mubr.msk.f32.mxu0 %vm370_vm0, %v288_v10 }
  0x96   : > { %3134 = vmatprep.mubr.msk.f32.mxu1 %vm370_vm0, %v360_v11 }
  0x98   : > { %3027 = vmatmul.mubr.msk.f32.gmra.mrb[66].mxu0 %vm370_vm0, %v289_v12 }
  0x99   : > { %3135 = vmatmul.mubr.msk.f32.gmra.mrb[66].mxu1 %vm370_vm0, %v361_v13  ;;  %3029 = vmatprep.mubr.msk.f32.mxu0 %vm370_vm0, %v290_v14 }
  0x9a   : > { %3137 = vmatprep.mubr.msk.f32.mxu1 %vm370_vm0, %v362_v15 }
  0x9c   : > { %3030 = vmatmul.mubr.msk.f32.gmra.mrb[68].mxu0 %vm370_vm0, %v291_v16 }
  0x9d   : > { %3138 = vmatmul.mubr.msk.f32.gmra.mrb[68].mxu1 %vm370_vm0, %v363_v17  ;;  %3032 = vmatprep.mubr.msk.f32.mxu0 %vm370_vm0, %v292_v18 }
  0x9e   : > { %3140 = vmatprep.mubr.msk.f32.mxu1 %vm370_vm0, %v364_v19 }
  0xa0   : > { %3033 = vmatmul.mubr.msk.f32.gmra.mrb[70].mxu0 %vm370_vm0, %v293_v20 }
  0xa1   : > { %3141 = vmatmul.mubr.msk.f32.gmra.mrb[70].mxu1 %vm370_vm0, %v365_v21 }
  0xe7   : > { %v2929_v22 = vpop.f32.mrb[0].mxu0 }
  0xe8   : > { %v3037_v23 = vpop.f32.mrb[0].mxu1  ;;  %1590 = vst.msk [vmem:[#allocation2 + $0x8] sm:$0xff] %vm1588_vm1, %v2929_v22  ;;  %v869_v24 = vpop.f32.mrb[1].mxu0 }
  0xe9   : > { %1662 = vst.msk [vmem:[#allocation2 + $0x248] sm:$0xff] %vm1588_vm1, %v3037_v23  ;;  %v1229_v25 = vpop.f32.mrb[1].mxu1  ;;  %1589 = vst.msk [vmem:[#allocation2] sm:$0xff] %vm1588_vm1, %v869_v24 }
  0xea   : > { %1661 = vst.msk [vmem:[#allocation2 + $0x240] sm:$0xff] %vm1588_vm1, %v1229_v25 }
  0xeb   : > { %v2932_v26 = vpop.f32.mrb[2].mxu0 }
  0xec   : > { %v3040_v27 = vpop.f32.mrb[2].mxu1  ;;  %1592 = vst.msk [vmem:[#allocation2 + $0x18] sm:$0xff] %vm1588_vm1, %v2932_v26  ;;  %v879_v28 = vpop.f32.mrb[3].mxu0 }
  0xed   : > { %1664 = vst.msk [vmem:[#allocation2 + $0x258] sm:$0xff] %vm1588_vm1, %v3040_v27  ;;  %v1239_v29 = vpop.f32.mrb[3].mxu1  ;;  %1591 = vst.msk [vmem:[#allocation2 + $0x10] sm:$0xff] %vm1588_vm1, %v879_v28 }
  0xee   : > { %1663 = vst.msk [vmem:[#allocation2 + $0x250] sm:$0xff] %vm1588_vm1, %v1239_v29 }
  0xef   : > { %v2935_v30 = vpop.f32.mrb[4].mxu0  ;;  %v1735_v46 = vld [vmem:[#allocation2 + $0x8] sm:$0xff] }
  0xf0   : > { %v3043_v31 = vpop.f32.mrb[4].mxu1  ;;  %1594 = vst.msk [vmem:[#allocation2 + $0x28] sm:$0xff] %vm1588_vm1, %v2935_v30  ;;  %v889_v32 = vpop.f32.mrb[5].mxu0  ;;  %v1734_v40 = vld [vmem:[#allocation2] sm:$0xff] }
  0xf1   : > { %1666 = vst.msk [vmem:[#allocation2 + $0x268] sm:$0xff] %vm1588_vm1, %v3043_v31  ;;  %v1249_v33 = vpop.f32.mrb[5].mxu1  ;;  %1593 = vst.msk [vmem:[#allocation2 + $0x20] sm:$0xff] %vm1588_vm1, %v889_v32 }
  0xf2   : > { %1665 = vst.msk [vmem:[#allocation2 + $0x260] sm:$0xff] %vm1588_vm1, %v1249_v33 }
  0xf3   : > { %v2938_v34 = vpop.f32.mrb[6].mxu0  ;;  %v1737_v62 = vld [vmem:[#allocation2 + $0x18] sm:$0xff] }
  0xf4   : > { %v3046_v35 = vpop.f32.mrb[6].mxu1  ;;  %1596 = vst.msk [vmem:[#allocation2 + $0x38] sm:$0xff] %vm1588_vm1, %v2938_v34  ;;  %v899_v36 = vpop.f32.mrb[7].mxu0  ;;  %v1736_v50 = vld [vmem:[#allocation2 + $0x10] sm:$0xff] }
  0xf5   : > { %1668 = vst.msk [vmem:[#allocation2 + $0x278] sm:$0xff] %vm1588_vm1, %v3046_v35  ;;  %v1259_v37 = vpop.f32.mrb[7].mxu1  ;;  %1595 = vst.msk [vmem:[#allocation2 + $0x30] sm:$0xff] %vm1588_vm1, %v899_v36 }
  0xf6   : > { %1667 = vst.msk [vmem:[#allocation2 + $0x270] sm:$0xff] %vm1588_vm1, %v1259_v37 }
  0xf7   : > { %v2941_v38 = vpop.f32.mrb[8].mxu0 }
  0xf8   : > { %v3049_v39 = vpop.f32.mrb[8].mxu1  ;;  %v1738_v42 = vld [vmem:[#allocation2 + $0x24] sm:$0xff]  ;;  %1598 = vst.msk [vmem:[#allocation2 + $0x48] sm:$0xff] %vm1588_vm1, %v2941_v38  ;;  %v909_v43 = vpop.f32.mrb[9].mxu0 }
  0xf9   : > { %1670 = vst.msk [vmem:[#allocation2 + $0x288] sm:$0xff] %vm1588_vm1, %v3049_v39  ;;  %v1269_v44 = vpop.f32.mrb[9].mxu1  ;;  %v1742_v45 = vmax.f32 %v1734_v40, %v1738_v42  ;;  %1597 = vst.msk [vmem:[#allocation2 + $0x40] sm:$0xff] %vm1588_vm1, %v909_v43 }
  0xfa   : > { %1669 = vst.msk [vmem:[#allocation2 + $0x280] sm:$0xff] %vm1588_vm1, %v1269_v44 }
  0xfb   : > { %v1752_v47 = vadd.f32 %v3570_v41, %v1742_v45  ;;  %v2944_v48 = vpop.f32.mrb[10].mxu0 }
  0xfc   : > { %v3052_v49 = vpop.f32.mrb[10].mxu1  ;;  %v1739_v51 = vld [vmem:[#allocation2 + $0x2c] sm:$0xff]  ;;  %v1740_v52 = vld [vmem:[#allocation2 + $0x34] sm:$0xff]  ;;  %1600 = vst.msk [vmem:[#allocation2 + $0x58] sm:$0xff] %vm1588_vm1, %v2944_v48  ;;  %v919_v53 = vpop.f32.mrb[11].mxu0 }
  0xfd   : > { %1672 = vst.msk [vmem:[#allocation2 + $0x298] sm:$0xff] %vm1588_vm1, %v3052_v49  ;;  %v1279_v54 = vpop.f32.mrb[11].mxu1  ;;  %v1756_v55 = vmax.f32 %v1752_v47, 0.0  ;;  %v1743_v56 = vmax.f32 %v1735_v46, %v1739_v51  ;;  %v1744_v57 = vmax.f32 %v1736_v50, %v1740_v52  ;;  %1599 = vst.msk [vmem:[#allocation2 + $0x50] sm:$0xff] %vm1588_vm1, %v919_v53 }
  0xfe   : > { %1671 = vst.msk [vmem:[#allocation2 + $0x290] sm:$0xff] %vm1588_vm1, %v1279_v54 }
  0xff   : > { %1760 = vst.msk [vmem:[#allocation2] sm:$0xff] %vm1588_vm1, %v1756_v55  ;;  %v1753_v58 = vadd.f32 %v3570_v41, %v1743_v56  ;;  %v1754_v59 = vadd.f32 %v3570_v41, %v1744_v57  ;;  %v2947_v60 = vpop.f32.mrb[12].mxu0  ;;  %v1764_v18 = vld [vmem:[#allocation2 + $0x48] sm:$0xff] }
 0x100   : > { %v3055_v61 = vpop.f32.mrb[12].mxu1  ;;  %v1741_v63 = vld [vmem:[#allocation2 + $0x3c] sm:$0xff]  ;;  %1602 = vst.msk [vmem:[#allocation2 + $0x68] sm:$0xff] %vm1588_vm1, %v2947_v60  ;;  %v929_v0 = vpop.f32.mrb[13].mxu0 }
 0x101   : > { %1674 = vst.msk [vmem:[#allocation2 + $0x2a8] sm:$0xff] %vm1588_vm1, %v3055_v61  ;;  %v1289_v1 = vpop.f32.mrb[13].mxu1  ;;  %v1757_v2 = vmax.f32 %v1753_v58, 0.0  ;;  %v1758_v3 = vmax.f32 %v1754_v59, 0.0  ;;  %v1745_v4 = vmax.f32 %v1737_v62, %v1741_v63  ;;  %1601 = vst.msk [vmem:[#allocation2 + $0x60] sm:$0xff] %vm1588_vm1, %v929_v0 }
 0x102   : > { %1673 = vst.msk [vmem:[#allocation2 + $0x2a0] sm:$0xff] %vm1588_vm1, %v1289_v1 }
 0x103   : > { %1761 = vst.msk [vmem:[#allocation2 + $0x8] sm:$0xff] %vm1588_vm1, %v1757_v2  ;;  %1762 = vst.msk [vmem:[#allocation2 + $0x10] sm:$0xff] %vm1588_vm1, %v1758_v3  ;;  %v1755_v5 = vadd.f32 %v3570_v41, %v1745_v4  ;;  %v2950_v6 = vpop.f32.mrb[14].mxu0  ;;  %v1766_v36 = vld [vmem:[#allocation2 + $0x58] sm:$0xff] }
 0x104   : > { %v3058_v7 = vpop.f32.mrb[14].mxu1  ;;  %1604 = vst.msk [vmem:[#allocation2 + $0x78] sm:$0xff] %vm1588_vm1, %v2950_v6  ;;  %v939_v8 = vpop.f32.mrb[15].mxu0  ;;  %v1765_v21 = vld [vmem:[#allocation2 + $0x50] sm:$0xff] }
 0x105   : > { %1676 = vst.msk [vmem:[#allocation2 + $0x2b8] sm:$0xff] %vm1588_vm1, %v3058_v7  ;;  %v1299_v9 = vpop.f32.mrb[15].mxu1  ;;  %v1759_v10 = vmax.f32 %v1755_v5, 0.0  ;;  %1603 = vst.msk [vmem:[#allocation2 + $0x70] sm:$0xff] %vm1588_vm1, %v939_v8 }
 0x106   : > { %1675 = vst.msk [vmem:[#allocation2 + $0x2b0] sm:$0xff] %vm1588_vm1, %v1299_v9 }
 0x107   : > { %1763 = vst.msk [vmem:[#allocation2 + $0x18] sm:$0xff] %vm1588_vm1, %v1759_v10  ;;  %v2953_v11 = vpop.f32.mrb[16].mxu0 }
 0x108   : > { %v3061_v12 = vpop.f32.mrb[16].mxu1  ;;  %1606 = vst.msk [vmem:[#allocation2 + $0x88] sm:$0xff] %vm1588_vm1, %v2953_v11  ;;  %v949_v13 = vpop.f32.mrb[17].mxu0  ;;  %v1767_v46 = vld [vmem:[#allocation2 + $0x60] sm:$0xff] }
 0x109   : > { %1678 = vst.msk [vmem:[#allocation2 + $0x2c8] sm:$0xff] %vm1588_vm1, %v3061_v12  ;;  %v1309_v14 = vpop.f32.mrb[17].mxu1  ;;  %1605 = vst.msk [vmem:[#allocation2 + $0x80] sm:$0xff] %vm1588_vm1, %v949_v13 }
 0x10a   : > { %1677 = vst.msk [vmem:[#allocation2 + $0x2c0] sm:$0xff] %vm1588_vm1, %v1309_v14  ;;  %v2124_v15 = vld [vmem:[#allocation2] ss:$2 sm:$0xff]  ;;  %v2188_v16 = vld [vmem:[#allocation2 + $0x1] ss:$2 sm:$0xff] }
 0x10b   : > { %v2251_v17 = vmax.f32 %v2124_v15, %v2188_v16  ;;  %v2956_v19 = vpop.f32.mrb[18].mxu0 }
 0x10c   : > { %v3064_v20 = vpop.f32.mrb[18].mxu1  ;;  %v1769_v22 = vld [vmem:[#allocation2 + $0x74] sm:$0xff]  ;;  %1608 = vst.msk [vmem:[#allocation2 + $0x98] sm:$0xff] %vm1588_vm1, %v2956_v19  ;;  %v959_v23 = vpop.f32.mrb[19].mxu0  ;;  %v1768_v25 = vld [vmem:[#allocation2 + $0x6c] sm:$0xff] }
 0x10d   : > { %1680 = vst.msk [vmem:[#allocation2 + $0x2d8] sm:$0xff] %vm1588_vm1, %v3064_v20  ;;  %v1319_v24 = vpop.f32.mrb[19].mxu1  ;;  %v2739_v26 = vpack.c.bf16 %v2251_v17, %v2251_v17  ;;  %v1773_v27 = vmax.f32 %v1765_v21, %v1769_v22  ;;  %1607 = vst.msk [vmem:[#allocation2 + $0x90] sm:$0xff] %vm1588_vm1, %v959_v23  ;;  %v1772_v28 = vmax.f32 %v1764_v18, %v1768_v25 }
 0x10e   : > { %1679 = vst.msk [vmem:[#allocation2 + $0x2d0] sm:$0xff] %vm1588_vm1, %v1319_v24  ;;  %v2126_v29 = vld [vmem:[#allocation2 + $0x10] ss:$2 sm:$0xff]  ;;  %v2190_v30 = vld [vmem:[#allocation2 + $0x11] ss:$2 sm:$0xff]  ;;  %v1936_v24 = vld [vmem:[#allocation2 + $0x264] sm:$0xff] }
 0x10f   : > { %2412 = vst.msk [vmem:[%s3604_s6] sm:$0xf] %vm2411_vm2, %v2739_v26  ;;  %v2252_v31 = vmax.f32 %v2126_v29, %v2190_v30  ;;  %v1777_v32 = vadd.f32 %v3570_v41, %v1773_v27  ;;  %v2959_v33 = vpop.f32.mrb[20].mxu0  ;;  %v1776_v35 = vadd.f32 %v3570_v41, %v1772_v28 }
 0x110   : > { %v3067_v34 = vpop.f32.mrb[20].mxu1  ;;  %v1770_v37 = vld [vmem:[#allocation2 + $0x7c] sm:$0xff]  ;;  %1610 = vst.msk [vmem:[#allocation2 + $0xa8] sm:$0xff] %vm1588_vm1, %v2959_v33  ;;  %v969_v38 = vpop.f32.mrb[21].mxu0  ;;  %v1771_v45 = vld [vmem:[#allocation2 + $0x84] sm:$0xff] }
 0x111   : > { %1682 = vst.msk [vmem:[#allocation2 + $0x2e8] sm:$0xff] %vm1588_vm1, %v3067_v34  ;;  %v1329_v39 = vpop.f32.mrb[21].mxu1  ;;  %v2740_v40 = vpack.c.bf16 %v2252_v31, %v2252_v31  ;;  %v1781_v42 = vmax.f32 %v1777_v32, 0.0  ;;  %v1774_v43 = vmax.f32 %v1766_v36, %v1770_v37  ;;  %1609 = vst.msk [vmem:[#allocation2 + $0xa0] sm:$0xff] %vm1588_vm1, %v969_v38  ;;  %v1780_v44 = vmax.f32 %v1776_v35, 0.0  ;;  %v1937_v32 = vld [vmem:[#allocation2 + $0x26c] sm:$0xff] }
 0x112   : > { %1681 = vst.msk [vmem:[#allocation2 + $0x2e0] sm:$0xff] %vm1588_vm1, %v1329_v39  ;;  %v1775_v50 = vmax.f32 %v1767_v46, %v1771_v45  ;;  %v1932_v33 = vld [vmem:[#allocation2 + $0x240] sm:$0xff]  ;;  %v1938_v37 = vld [vmem:[#allocation2 + $0x274] sm:$0xff]  ;;  %v1933_v39 = vld [vmem:[#allocation2 + $0x248] sm:$0xff] }
 0x113   : > { %2413 = vst.msk [vmem:[%s3604_s6 + $0x4] sm:$0xf] %vm2411_vm2, %v2740_v40  ;;  %v1778_v47 = vadd.f32 %v3570_v41, %v1774_v43  ;;  %v2962_v48 = vpop.f32.mrb[22].mxu0  ;;  %v1789_v16 = vld [vmem:[#allocation2 + $0x98] sm:$0xff]  ;;  %v1940_v36 = vmax.f32 %v1932_v33, %v1936_v24 }
 0x114   : > { %1785 = vst.msk [vmem:[#allocation2 + $0x28] sm:$0xff] %vm1588_vm1, %v1781_v42  ;;  %v3070_v49 = vpop.f32.mrb[22].mxu1  ;;  %1784 = vst.msk [vmem:[#allocation2 + $0x20] sm:$0xff] %vm1588_vm1, %v1780_v44  ;;  %v979_v51 = vpop.f32.mrb[23].mxu0  ;;  %v1779_v54 = vadd.f32 %v3570_v41, %v1775_v50  ;;  %v1788_v3 = vld [vmem:[#allocation2 + $0x90] sm:$0xff]  ;;  %v1941_v44 = vmax.f32 %v1933_v39, %v1937_v32 }
 0x115   : > { %1612 = vst.msk [vmem:[#allocation2 + $0xb8] sm:$0xff] %vm1588_vm1, %v2962_v48  ;;  %1684 = vst.msk [vmem:[#allocation2 + $0x2f8] sm:$0xff] %vm1588_vm1, %v3070_v49  ;;  %v1339_v52 = vpop.f32.mrb[23].mxu1  ;;  %v1782_v53 = vmax.f32 %v1778_v47, 0.0  ;;  %v1934_v47 = vld [vmem:[#allocation2 + $0x250] sm:$0xff]  ;;  %v1939_v48 = vld [vmem:[#allocation2 + $0x27c] sm:$0xff] }
 0x116   : > { %1611 = vst.msk [vmem:[#allocation2 + $0xb0] sm:$0xff] %vm1588_vm1, %v979_v51  ;;  %1683 = vst.msk [vmem:[#allocation2 + $0x2f0] sm:$0xff] %vm1588_vm1, %v1339_v52  ;;  %v1783_v57 = vmax.f32 %v1779_v54, 0.0  ;;  %v1942_v49 = vmax.f32 %v1934_v47, %v1938_v37  ;;  %v1944_v51 = vadd.f32 %v3570_v41, %v1940_v36  ;;  %v1935_v52 = vld [vmem:[#allocation2 + $0x258] sm:$0xff] }
 0x117   : > { %1786 = vst.msk [vmem:[#allocation2 + $0x30] sm:$0xff] %vm1588_vm1, %v1782_v53  ;;  %v2965_v55 = vpop.f32.mrb[24].mxu0  ;;  %v1791_v31 = vld [vmem:[#allocation2 + $0xa8] sm:$0xff]  ;;  %v1961_v53 = vld [vmem:[#allocation2 + $0x2b4] sm:$0xff] }
 0x118   : > { %v3073_v56 = vpop.f32.mrb[24].mxu1  ;;  %1614 = vst.msk [vmem:[#allocation2 + $0xc8] sm:$0xff] %vm1588_vm1, %v2965_v55  ;;  %v989_v58 = vpop.f32.mrb[25].mxu0  ;;  %1787 = vst.msk [vmem:[#allocation2 + $0x38] sm:$0xff] %vm1588_vm1, %v1783_v57  ;;  %v1790_v14 = vld [vmem:[#allocation2 + $0xa0] sm:$0xff]  ;;  %v1960_v57 = vld [vmem:[#allocation2 + $0x2ac] sm:$0xff] }
 0x119   : > { %1686 = vst.msk [vmem:[#allocation2 + $0x308] sm:$0xff] %vm1588_vm1, %v3073_v56  ;;  %v1349_v59 = vpop.f32.mrb[25].mxu1  ;;  %1613 = vst.msk [vmem:[#allocation2 + $0xc0] sm:$0xff] %vm1588_vm1, %v989_v58  ;;  %v1943_v56 = vmax.f32 %v1935_v52, %v1939_v48  ;;  %v1980_v52 = vld [vmem:[#allocation2 + $0x2d0] sm:$0xff] }
 0x11a   : > { %1685 = vst.msk [vmem:[#allocation2 + $0x300] sm:$0xff] %vm1588_vm1, %v1349_v59  ;;  %v3666_v59 = vadd.f32 %v3570_v41, %v1941_v44 }
 0x11b   : > { %v2128_v60 = vld [vmem:[#allocation2 + $0x20] ss:$2 sm:$0xff]  ;;  %v2192_v61 = vld [vmem:[#allocation2 + $0x21] ss:$2 sm:$0xff]  ;;  %v2968_v62 = vpop.f32.mrb[26].mxu0 }
 0x11c   : > { %v3076_v63 = vpop.f32.mrb[26].mxu1  ;;  %v2253_v0 = vmax.f32 %v2128_v60, %v2192_v61  ;;  %1616 = vst.msk [vmem:[#allocation2 + $0xd8] sm:$0xff] %vm1588_vm1, %v2968_v62  ;;  %v999_v1 = vpop.f32.mrb[27].mxu0  ;;  %v1957_v61 = vld [vmem:[#allocation2 + $0x290] sm:$0xff]  ;;  %v1946_v62 = vadd.f32 %v3570_v41, %v1942_v49 }
 0x11d   : > { %1688 = vst.msk [vmem:[#allocation2 + $0x318] sm:$0xff] %vm1588_vm1, %v3076_v63  ;;  %v1359_v2 = vpop.f32.mrb[27].mxu1  ;;  %v1792_v4 = vld [vmem:[#allocation2 + $0xb4] sm:$0xff]  ;;  %1615 = vst.msk [vmem:[#allocation2 + $0xd0] sm:$0xff] %vm1588_vm1, %v999_v1  ;;  %v1965_v63 = vmax.f32 %v1957_v61, %v1961_v53 }
 0x11e   : > { %1687 = vst.msk [vmem:[#allocation2 + $0x310] sm:$0xff] %vm1588_vm1, %v1359_v2  ;;  %v2741_v5 = vpack.c.bf16 %v2253_v0, %v2253_v0  ;;  %v1796_v6 = vmax.f32 %v1788_v3, %v1792_v4  ;;  %v1956_v0 = vld [vmem:[#allocation2 + $0x288] sm:$0xff]  ;;  %v1948_v2 = vmax.f32 %v1944_v51, 0.0  ;;  %v1984_v36 = vld [vmem:[#allocation2 + $0x2f4] sm:$0xff] }
 0x11f   : > { %v2971_v7 = vpop.f32.mrb[28].mxu0  ;;  %v2130_v13 = vld [vmem:[#allocation2 + $0x30] ss:$2 sm:$0xff]  ;;  %v2194_v15 = vld [vmem:[#allocation2 + $0x31] ss:$2 sm:$0xff]  ;;  %v1964_v3 = vmax.f32 %v1956_v0, %v1960_v57  ;;  %v1963_v4 = vld [vmem:[#allocation2 + $0x2c4] sm:$0xff] }
 0x120   : > { %v3079_v8 = vpop.f32.mrb[28].mxu1  ;;  %2414 = vst.msk [vmem:[%s3604_s6 + $0x8] sm:$0xf] %vm2411_vm2, %v2741_v5  ;;  %v1800_v9 = vadd.f32 %v3570_v41, %v1796_v6  ;;  %v1794_v10 = vld [vmem:[#allocation2 + $0xc4] sm:$0xff]  ;;  %v1009_v11 = vpop.f32.mrb[29].mxu0  ;;  %v1793_v17 = vld [vmem:[#allocation2 + $0xbc] sm:$0xff]  ;;  %v2254_v20 = vmax.f32 %v2130_v13, %v2194_v15  ;;  %v1947_v6 = vadd.f32 %v3570_v41, %v1943_v56 }
 0x121   : > { %1618 = vst.msk [vmem:[#allocation2 + $0xe8] sm:$0xff] %vm1588_vm1, %v2971_v7  ;;  %1690 = vst.msk [vmem:[#allocation2 + $0x328] sm:$0xff] %vm1588_vm1, %v3079_v8  ;;  %v1369_v12 = vpop.f32.mrb[29].mxu1  ;;  %v1798_v18 = vmax.f32 %v1790_v14, %v1794_v10  ;;  %v1797_v21 = vmax.f32 %v1789_v16, %v1793_v17  ;;  %v1962_v5 = vld [vmem:[#allocation2 + $0x2bc] sm:$0xff]  ;;  %v1949_v14 = vmax.f32 %v3666_v59, 0.0  ;;  %v1968_v24 = vadd.f32 %v3570_v41, %v1964_v3 }
 0x122   : > { %1617 = vst.msk [vmem:[#allocation2 + $0xe0] sm:$0xff] %vm1588_vm1, %v1009_v11  ;;  %1689 = vst.msk [vmem:[#allocation2 + $0x320] sm:$0xff] %vm1588_vm1, %v1369_v12  ;;  %v1804_v19 = vmax.f32 %v1800_v9, 0.0  ;;  %v2742_v29 = vpack.c.bf16 %v2254_v20, %v2254_v20  ;;  %v1950_v20 = vmax.f32 %v1946_v62, 0.0  ;;  %v1951_v33 = vmax.f32 %v1947_v6, 0.0  ;;  %v1982_v6 = vld [vmem:[#allocation2 + $0x2e0] sm:$0xff] }
 0x123   : > { %v2974_v22 = vpop.f32.mrb[30].mxu0  ;;  %v1802_v25 = vadd.f32 %v3570_v41, %v1798_v18  ;;  %v1801_v30 = vadd.f32 %v3570_v41, %v1797_v21  ;;  %v1812_v1 = vld [vmem:[#allocation2 + $0xd8] sm:$0xff]  ;;  %v1969_v21 = vadd.f32 %v3570_v41, %v1965_v63  ;;  %v1972_v49 = vmax.f32 %v1968_v24, 0.0 }
 0x124   : > { %v3082_v23 = vpop.f32.mrb[30].mxu1  ;;  %1808 = vst.msk [vmem:[#allocation2 + $0x40] sm:$0xff] %vm1588_vm1, %v1804_v19  ;;  %v1795_v26 = vld [vmem:[#allocation2 + $0xcc] sm:$0xff]  ;;  %1620 = vst.msk [vmem:[#allocation2 + $0xf8] sm:$0xff] %vm1588_vm1, %v2974_v22  ;;  %v1019_v27 = vpop.f32.mrb[31].mxu0  ;;  %v1959_v22 = vld [vmem:[#allocation2 + $0x2a0] sm:$0xff] }
 0x125   : > { %1692 = vst.msk [vmem:[#allocation2 + $0x338] sm:$0xff] %vm1588_vm1, %v3082_v23  ;;  %v1379_v28 = vpop.f32.mrb[31].mxu1  ;;  %1619 = vst.msk [vmem:[#allocation2 + $0xf0] sm:$0xff] %vm1588_vm1, %v1019_v27  ;;  %v1799_v34 = vmax.f32 %v1791_v31, %v1795_v26  ;;  %v1806_v35 = vmax.f32 %v1802_v25, 0.0  ;;  %v1805_v38 = vmax.f32 %v1801_v30, 0.0  ;;  %v1958_v23 = vld [vmem:[#allocation2 + $0x298] sm:$0xff]  ;;  %v1967_v25 = vmax.f32 %v1959_v22, %v1963_v4 }
 0x126   : > { %1691 = vst.msk [vmem:[#allocation2 + $0x330] sm:$0xff] %vm1588_vm1, %v1379_v28  ;;  %v1966_v26 = vmax.f32 %v1958_v23, %v1962_v5  ;;  %v1973_v48 = vmax.f32 %v1969_v21, 0.0  ;;  %v1985_v63 = vld [vmem:[#allocation2 + $0x2fc] sm:$0xff]  ;;  %v1987_v3 = vld [vmem:[#allocation2 + $0x30c] sm:$0xff] }
 0x127   : > { %2415 = vst.msk [vmem:[%s3604_s6 + $0xc] sm:$0xf] %vm2411_vm2, %v2742_v29  ;;  %v2977_v40 = vpop.f32.mrb[32].mxu0  ;;  %v1803_v43 = vadd.f32 %v3570_v41, %v1799_v34  ;;  %v1981_v4 = vld [vmem:[#allocation2 + $0x2d8] sm:$0xff] }
 0x128   : > { %v3085_v42 = vpop.f32.mrb[32].mxu1  ;;  %1810 = vst.msk [vmem:[#allocation2 + $0x50] sm:$0xff] %vm1588_vm1, %v1806_v35  ;;  %1622 = vst.msk [vmem:[#allocation2 + $0x108] sm:$0xff] %vm1588_vm1, %v2977_v40  ;;  %v1029_v45 = vpop.f32.mrb[33].mxu0  ;;  %v1814_v32 = vld [vmem:[#allocation2 + $0xe8] sm:$0xff]  ;;  %v1970_v51 = vadd.f32 %v3570_v41, %v1966_v26 }
 0x129   : > { %1694 = vst.msk [vmem:[#allocation2 + $0x348] sm:$0xff] %vm1588_vm1, %v3085_v42  ;;  %v1389_v46 = vpop.f32.mrb[33].mxu1  ;;  %1809 = vst.msk [vmem:[#allocation2 + $0x48] sm:$0xff] %vm1588_vm1, %v1805_v38  ;;  %v1807_v50 = vmax.f32 %v1803_v43, 0.0  ;;  %v1813_v11 = vld [vmem:[#allocation2 + $0xe0] sm:$0xff] }
 0x12a   : > { %1621 = vst.msk [vmem:[#allocation2 + $0x100] sm:$0xff] %vm1588_vm1, %v1029_v45  ;;  %1693 = vst.msk [vmem:[#allocation2 + $0x340] sm:$0xff] %vm1588_vm1, %v1389_v46 }
 0x12b   : > { %v2980_v54 = vpop.f32.mrb[34].mxu0  ;;  %1811 = vst.msk [vmem:[#allocation2 + $0x58] sm:$0xff] %vm1588_vm1, %v1807_v50  ;;  %v1971_v50 = vadd.f32 %v3570_v41, %v1967_v25 }
 0x12c   : > { %v3088_v55 = vpop.f32.mrb[34].mxu1  ;;  %1624 = vst.msk [vmem:[#allocation2 + $0x118] sm:$0xff] %vm1588_vm1, %v2980_v54  ;;  %v1039_v58 = vpop.f32.mrb[35].mxu0  ;;  %v1815_v38 = vld [vmem:[#allocation2 + $0xf0] sm:$0xff] }
 0x12d   : > { %1696 = vst.msk [vmem:[#allocation2 + $0x358] sm:$0xff] %vm1588_vm1, %v3088_v55  ;;  %v1399_v60 = vpop.f32.mrb[35].mxu1  ;;  %1623 = vst.msk [vmem:[#allocation2 + $0x110] sm:$0xff] %vm1588_vm1, %v1039_v58  ;;  %v1988_v58 = vmax.f32 %v1980_v52, %v1984_v36  ;;  %v1975_v5 = vmax.f32 %v1971_v50, 0.0 }
 0x12e   : > { %1695 = vst.msk [vmem:[#allocation2 + $0x350] sm:$0xff] %vm1588_vm1, %v1399_v60 }
 0x12f   : > { %v2983_v7 = vpop.f32.mrb[36].mxu0 }
 0x130   : > { %v3091_v8 = vpop.f32.mrb[36].mxu1  ;;  %v2132_v9 = vld [vmem:[#allocation2 + $0x40] ss:$2 sm:$0xff]  ;;  %v2196_v10 = vld [vmem:[#allocation2 + $0x41] ss:$2 sm:$0xff]  ;;  %1626 = vst.msk [vmem:[#allocation2 + $0x128] sm:$0xff] %vm1588_vm1, %v2983_v7 }
 0x131   : > { %v1816_v12 = vld [vmem:[#allocation2 + $0xfc] sm:$0xff]  ;;  %v1817_v13 = vld [vmem:[#allocation2 + $0x104] sm:$0xff]  ;;  %1698 = vst.msk [vmem:[#allocation2 + $0x368] sm:$0xff] %vm1588_vm1, %v3091_v8  ;;  %v1049_v15 = vpop.f32.mrb[37].mxu0  ;;  %v1409_v16 = vpop.f32.mrb[37].mxu1  ;;  %v2255_v17 = vmax.f32 %v2132_v9, %v2196_v10  ;;  %v1974_v9 = vmax.f32 %v1970_v51, 0.0  ;;  %v1992_v10 = vadd.f32 %v3570_v41, %v1988_v58 }
 0x132   : > { %v1820_v18 = vmax.f32 %v1812_v1, %v1816_v12  ;;  %v1821_v19 = vmax.f32 %v1813_v11, %v1817_v13  ;;  %1952 = vst.msk [vmem:[#allocation2 + $0x100] sm:$0xff] %vm1588_vm1, %v1948_v2  ;;  %1625 = vst.msk [vmem:[#allocation2 + $0x120] sm:$0xff] %vm1588_vm1, %v1049_v15  ;;  %v2134_v27 = vld [vmem:[#allocation2 + $0x50] ss:$2 sm:$0xff]  ;;  %v2198_v28 = vld [vmem:[#allocation2 + $0x51] ss:$2 sm:$0xff] }
 0x133   : > { %1697 = vst.msk [vmem:[#allocation2 + $0x360] sm:$0xff] %vm1588_vm1, %v1409_v16  ;;  %v2743_v29 = vpack.c.bf16 %v2255_v17, %v2255_v17  ;;  %v2986_v34 = vpop.f32.mrb[38].mxu0  ;;  %v2256_v37 = vmax.f32 %v2134_v27, %v2198_v28  ;;  %v1986_v2 = vld [vmem:[#allocation2 + $0x304] sm:$0xff]  ;;  %v2008_v15 = vld [vmem:[#allocation2 + $0x33c] sm:$0xff]  ;;  %v1989_v16 = vmax.f32 %v1981_v4, %v1985_v63 }
 0x134   : > { %v1824_v30 = vadd.f32 %v3570_v41, %v1820_v18  ;;  %v1825_v31 = vadd.f32 %v3570_v41, %v1821_v19  ;;  %v3094_v35 = vpop.f32.mrb[38].mxu1  ;;  %v1818_v39 = vld [vmem:[#allocation2 + $0x10c] sm:$0xff]  ;;  %v1819_v40 = vld [vmem:[#allocation2 + $0x114] sm:$0xff]  ;;  %1628 = vst.msk [vmem:[#allocation2 + $0x138] sm:$0xff] %vm1588_vm1, %v2986_v34  ;;  %v1059_v42 = vpop.f32.mrb[39].mxu0  ;;  %v2009_v13 = vld [vmem:[#allocation2 + $0x344] sm:$0xff] }
 0x135   : > { %1700 = vst.msk [vmem:[#allocation2 + $0x378] sm:$0xff] %vm1588_vm1, %v3094_v35  ;;  %v1419_v43 = vpop.f32.mrb[39].mxu1  ;;  %v1822_v46 = vmax.f32 %v1814_v32, %v1818_v39  ;;  %v1823_v47 = vmax.f32 %v1815_v38, %v1819_v40  ;;  %1953 = vst.msk [vmem:[#allocation2 + $0x108] sm:$0xff] %vm1588_vm1, %v1949_v14  ;;  %v2744_v59 = vpack.c.bf16 %v2256_v37, %v2256_v37  ;;  %v1983_v7 = vld [vmem:[#allocation2 + $0x2e8] sm:$0xff]  ;;  %v2004_v14 = vld [vmem:[#allocation2 + $0x318] sm:$0xff]  ;;  %v1996_v35 = vmax.f32 %v1992_v10, 0.0 }
 0x136   : > { %2416 = vst.msk [vmem:[%s3604_s6 + $0x10] sm:$0xf] %vm2411_vm2, %v2743_v29  ;;  %v1828_v44 = vmax.f32 %v1824_v30, 0.0  ;;  %v1829_v45 = vmax.f32 %v1825_v31, 0.0  ;;  %v1991_v21 = vmax.f32 %v1983_v7, %v1987_v3  ;;  %v2005_v27 = vld [vmem:[#allocation2 + $0x320] sm:$0xff]  ;;  %v2012_v32 = vmax.f32 %v2004_v14, %v2008_v15  ;;  %v2011_v38 = vld [vmem:[#allocation2 + $0x354] sm:$0xff] }
 0x137   : > { %1954 = vst.msk [vmem:[#allocation2 + $0x110] sm:$0xff] %vm1588_vm1, %v1950_v20  ;;  %1955 = vst.msk [vmem:[#allocation2 + $0x118] sm:$0xff] %vm1588_vm1, %v1951_v33  ;;  %v1826_v53 = vadd.f32 %v3570_v41, %v1822_v46  ;;  %v1827_v54 = vadd.f32 %v3570_v41, %v1823_v47  ;;  %v3697_v55 = vld [vmem:[#allocation2 + $0x128] sm:$0xff]  ;;  %v2989_v56 = vpop.f32.mrb[40].mxu0  ;;  %v1990_v20 = vmax.f32 %v1982_v6, %v1986_v2 }
 0x138   : > { %1627 = vst.msk [vmem:[#allocation2 + $0x130] sm:$0xff] %vm1588_vm1, %v1059_v42  ;;  %1699 = vst.msk [vmem:[#allocation2 + $0x370] sm:$0xff] %vm1588_vm1, %v1419_v43  ;;  %v3097_v57 = vpop.f32.mrb[40].mxu1  ;;  %v1069_v61 = vpop.f32.mrb[41].mxu0  ;;  %v2013_v31 = vmax.f32 %v2005_v27, %v2009_v13  ;;  %v3722_v39 = vld [vmem:[#allocation2 + $0x34c] sm:$0xff]  ;;  %v2016_v58 = vadd.f32 %v3570_v41, %v2012_v32 }
 0x139   : > { %1832 = vst.msk [vmem:[#allocation2 + $0x60] sm:$0xff] %vm1588_vm1, %v1828_v44  ;;  %1833 = vst.msk [vmem:[#allocation2 + $0x68] sm:$0xff] %vm1588_vm1, %v1829_v45  ;;  %v3700_v60 = vld [vmem:[#allocation2 + $0x120] sm:$0xff]  ;;  %v1429_v62 = vpop.f32.mrb[41].mxu1  ;;  %v1830_v0 = vmax.f32 %v1826_v53, 0.0  ;;  %v1831_v1 = vmax.f32 %v1827_v54, 0.0  ;;  %v1993_v45 = vadd.f32 %v3570_v41, %v1989_v16  ;;  %v1994_v46 = vadd.f32 %v3570_v41, %v1990_v20 }
 0x13a   : > { %1977 = vst.msk [vmem:[#allocation2 + $0x128] sm:$0xff] %vm1588_vm1, %v1973_v48  ;;  %1630 = vst.msk [vmem:[#allocation2 + $0x148] sm:$0xff] %vm1588_vm1, %v2989_v56  ;;  %v3729_v48 = vadd.f32 %v3570_v41, %v1991_v21  ;;  %v2007_v53 = vld [vmem:[#allocation2 + $0x330] sm:$0xff]  ;;  %v2028_v20 = vld [vmem:[#allocation2 + $0x360] sm:$0xff] }
 0x13b   : > { %1702 = vst.msk [vmem:[#allocation2 + $0x388] sm:$0xff] %vm1588_vm1, %v3097_v57  ;;  %1976 = vst.msk [vmem:[#allocation2 + $0x120] sm:$0xff] %vm1588_vm1, %v1972_v49  ;;  %v3711_v8 = vld [vmem:[#allocation2 + $0x138] sm:$0xff]  ;;  %v2992_v11 = vpop.f32.mrb[42].mxu0  ;;  %v2017_v57 = vadd.f32 %v3570_v41, %v2013_v31  ;;  %v1997_v3 = vmax.f32 %v1993_v45, 0.0  ;;  %v1998_v4 = vmax.f32 %v1994_v46, 0.0 }
 0x13c   : > { %1629 = vst.msk [vmem:[#allocation2 + $0x140] sm:$0xff] %vm1588_vm1, %v1069_v61  ;;  %1701 = vst.msk [vmem:[#allocation2 + $0x380] sm:$0xff] %vm1588_vm1, %v1429_v62  ;;  %v3100_v12 = vpop.f32.mrb[42].mxu1  ;;  %v2156_v17 = vld [vmem:[#allocation2 + $0x100] ss:$2 sm:$0xff]  ;;  %v1079_v25 = vpop.f32.mrb[43].mxu0 }
 0x13d   : > { %2417 = vst.msk [vmem:[%s3604_s6 + $0x14] sm:$0xf] %vm2411_vm2, %v2744_v59  ;;  %v2220_v19 = vld [vmem:[#allocation2 + $0x101] ss:$2 sm:$0xff]  ;;  %v1439_v26 = vpop.f32.mrb[43].mxu1  ;;  %v2015_v59 = vmax.f32 %v2007_v53, %v2011_v38 }
 0x13e   : > { %1834 = vst.msk [vmem:[#allocation2 + $0x70] sm:$0xff] %vm1588_vm1, %v1830_v0  ;;  %1835 = vst.msk [vmem:[#allocation2 + $0x78] sm:$0xff] %vm1588_vm1, %v1831_v1  ;;  %v2158_v18 = vld [vmem:[#allocation2 + $0x110] ss:$2 sm:$0xff]  ;;  %v2222_v22 = vld [vmem:[#allocation2 + $0x111] ss:$2 sm:$0xff]  ;;  %v2267_v23 = vmax.f32 %v2156_v17, %v2220_v19 }
 0x13f   : > { %1979 = vst.msk [vmem:[#allocation2 + $0x138] sm:$0xff] %vm1588_vm1, %v1975_v5  ;;  %1632 = vst.msk [vmem:[#allocation2 + $0x158] sm:$0xff] %vm1588_vm1, %v2992_v11  ;;  %v3717_v24 = vld [vmem:[#allocation2 + $0x130] sm:$0xff]  ;;  %v2268_v30 = vmax.f32 %v2158_v18, %v2222_v22  ;;  %v2995_v36 = vpop.f32.mrb[44].mxu0  ;;  %v2006_v61 = vld [vmem:[#allocation2 + $0x328] sm:$0xff]  ;;  %v1999_v5 = vmax.f32 %v3729_v48, 0.0  ;;  %v2019_v19 = vadd.f32 %v3570_v41, %v2015_v59 }
 0x140   : > { %1704 = vst.msk [vmem:[#allocation2 + $0x398] sm:$0xff] %vm1588_vm1, %v3100_v12  ;;  %v2136_v28 = vld [vmem:[#allocation2 + $0x60] ss:$2 sm:$0xff]  ;;  %v2200_v29 = vld [vmem:[#allocation2 + $0x61] ss:$2 sm:$0xff]  ;;  %1978 = vst.msk [vmem:[#allocation2 + $0x130] sm:$0xff] %vm1588_vm1, %v1974_v9  ;;  %v2755_v34 = vpack.c.bf16 %v2267_v23, %v2267_v23  ;;  %v2014_v2 = vmax.f32 %v2006_v61, %v3722_v39 }
 0x141   : > { %1631 = vst.msk [vmem:[#allocation2 + $0x150] sm:$0xff] %vm1588_vm1, %v1079_v25  ;;  %1703 = vst.msk [vmem:[#allocation2 + $0x390] sm:$0xff] %vm1588_vm1, %v1439_v26  ;;  %v2257_v33 = vmax.f32 %v2136_v28, %v2200_v29  ;;  %v3103_v37 = vpop.f32.mrb[44].mxu1  ;;  %v2756_v40 = vpack.c.bf16 %v2268_v30, %v2268_v30  ;;  %v1089_v47 = vpop.f32.mrb[45].mxu0  ;;  %v2021_v18 = vmax.f32 %v2017_v57, 0.0  ;;  %v2020_v23 = vmax.f32 %v2016_v58, 0.0 }
 0x142   : > { %v2160_v42 = vld [vmem:[#allocation2 + $0x120] ss:$2 sm:$0xff]  ;;  %v2224_v43 = vld [vmem:[#allocation2 + $0x121] ss:$2 sm:$0xff]  ;;  %1634 = vst.msk [vmem:[#allocation2 + $0x168] sm:$0xff] %vm1588_vm1, %v2995_v36  ;;  %1706 = vst.msk [vmem:[#allocation2 + $0x3a8] sm:$0xff] %vm1588_vm1, %v3103_v37  ;;  %v2018_v25 = vadd.f32 %v3570_v41, %v2014_v2 }
 0x143   : > { %v1840_v44 = vld [vmem:[#allocation2 + $0x144] sm:$0xff]  ;;  %v2745_v49 = vpack.c.bf16 %v2257_v33, %v2257_v33  ;;  %2428 = vst.msk [vmem:[%s3604_s6 + $0x40] sm:$0xf] %vm2411_vm2, %v2755_v34  ;;  %v2269_v50 = vmax.f32 %v2160_v42, %v2224_v43  ;;  %v1449_v52 = vpop.f32.mrb[45].mxu1  ;;  %2429 = vst.msk [vmem:[%s3604_s6 + $0x44] sm:$0xf] %vm2411_vm2, %v2756_v40 }
 0x144   : > { %v1844_v51 = vmax.f32 %v3700_v60, %v1840_v44  ;;  %2000 = vst.msk [vmem:[#allocation2 + $0x140] sm:$0xff] %vm1588_vm1, %v1996_v35  ;;  %1633 = vst.msk [vmem:[#allocation2 + $0x160] sm:$0xff] %vm1588_vm1, %v1089_v47  ;;  %v2998_v0 = vpop.f32.mrb[46].mxu0  ;;  %v3106_v1 = vpop.f32.mrb[46].mxu1  ;;  %v2032_v9 = vld [vmem:[#allocation2 + $0x384] sm:$0xff]  ;;  %v2030_v37 = vld [vmem:[#allocation2 + $0x370] sm:$0xff] }
 0x145   : > { %v2138_v54 = vld [vmem:[#allocation2 + $0x70] ss:$2 sm:$0xff]  ;;  %v2202_v56 = vld [vmem:[#allocation2 + $0x71] ss:$2 sm:$0xff]  ;;  %1705 = vst.msk [vmem:[#allocation2 + $0x3a0] sm:$0xff] %vm1588_vm1, %v1449_v52  ;;  %v2757_v62 = vpack.c.bf16 %v2269_v50, %v2269_v50  ;;  %1636 = vst.msk [vmem:[#allocation2 + $0x178] sm:$0xff] %vm1588_vm1, %v2998_v0  ;;  %v2036_v27 = vmax.f32 %v2028_v20, %v2032_v9 }
 0x146   : > { %2418 = vst.msk [vmem:[%s3604_s6 + $0x18] sm:$0xf] %vm2411_vm2, %v2745_v49  ;;  %v2258_v60 = vmax.f32 %v2138_v54, %v2202_v56  ;;  %v1848_v63 = vadd.f32 %v3570_v41, %v1844_v51  ;;  %v1099_v6 = vpop.f32.mrb[47].mxu0  ;;  %v1459_v7 = vpop.f32.mrb[47].mxu1  ;;  %v2029_v36 = vld [vmem:[#allocation2 + $0x368] sm:$0xff]  ;;  %v2023_v39 = vmax.f32 %v2019_v19, 0.0 }
 0x147   : > { %1708 = vst.msk [vmem:[#allocation2 + $0x3b8] sm:$0xff] %vm1588_vm1, %v3106_v1  ;;  %v2162_v11 = vld [vmem:[#allocation2 + $0x130] ss:$2 sm:$0xff]  ;;  %v2226_v12 = vld [vmem:[#allocation2 + $0x131] ss:$2 sm:$0xff]  ;;  %1635 = vst.msk [vmem:[#allocation2 + $0x170] sm:$0xff] %vm1588_vm1, %v1099_v6  ;;  %v2040_v46 = vadd.f32 %v3570_v41, %v2036_v27 }
 0x148   : > { %v2746_v10 = vpack.c.bf16 %v2258_v60, %v2258_v60  ;;  %2430 = vst.msk [vmem:[%s3604_s6 + $0x48] sm:$0xf] %vm2411_vm2, %v2757_v62  ;;  %v1852_v13 = vmax.f32 %v1848_v63, 0.0  ;;  %v1841_v14 = vld [vmem:[#allocation2 + $0x14c] sm:$0xff]  ;;  %v2270_v15 = vmax.f32 %v2162_v11, %v2226_v12  ;;  %v1842_v16 = vld [vmem:[#allocation2 + $0x154] sm:$0xff]  ;;  %v3109_v26 = vpop.f32.mrb[48].mxu1 }
 0x149   : > { %1707 = vst.msk [vmem:[#allocation2 + $0x3b0] sm:$0xff] %vm1588_vm1, %v1459_v7  ;;  %v1845_v17 = vmax.f32 %v3697_v55, %v1841_v14  ;;  %2001 = vst.msk [vmem:[#allocation2 + $0x148] sm:$0xff] %vm1588_vm1, %v1997_v3  ;;  %v1846_v21 = vmax.f32 %v3717_v24, %v1842_v16  ;;  %v3760_v22 = vld [vmem:[#allocation2 + $0x168] sm:$0xff]  ;;  %v3001_v55 = vpop.f32.mrb[48].mxu0  ;;  %v2034_v29 = vld [vmem:[#allocation2 + $0x394] sm:$0xff]  ;;  %v1469_v33 = vpop.f32.mrb[49].mxu1 }
 0x14a   : > { %2419 = vst.msk [vmem:[%s3604_s6 + $0x1c] sm:$0xf] %vm2411_vm2, %v2746_v10  ;;  %v2033_v28 = vld [vmem:[#allocation2 + $0x38c] sm:$0xff]  ;;  %v2758_v30 = vpack.c.bf16 %v2270_v15, %v2270_v15  ;;  %v1109_v24 = vpop.f32.mrb[49].mxu0  ;;  %v2038_v42 = vmax.f32 %v2030_v37, %v2034_v29  ;;  %v2022_v45 = vmax.f32 %v2018_v25, 0.0  ;;  %v2031_v61 = vld [vmem:[#allocation2 + $0x378] sm:$0xff] }
 0x14b   : > { %1856 = vst.msk [vmem:[#allocation2 + $0x80] sm:$0xff] %vm1588_vm1, %v1852_v13  ;;  %2002 = vst.msk [vmem:[#allocation2 + $0x150] sm:$0xff] %vm1588_vm1, %v1998_v4  ;;  %v1849_v31 = vadd.f32 %v3570_v41, %v1845_v17  ;;  %v1843_v32 = vld [vmem:[#allocation2 + $0x15c] sm:$0xff]  ;;  %v1850_v34 = vadd.f32 %v3570_v41, %v1846_v21  ;;  %v2037_v40 = vmax.f32 %v2029_v36, %v2033_v28  ;;  %v3004_v47 = vpop.f32.mrb[50].mxu0  ;;  %v2044_v60 = vmax.f32 %v2040_v46, 0.0  ;;  %v2052_v17 = vld [vmem:[#allocation2 + $0x3a8] sm:$0xff] }
 0x14c   : > { %2025 = vst.msk [vmem:[#allocation2 + $0x168] sm:$0xff] %vm1588_vm1, %v2021_v18  ;;  %1638 = vst.msk [vmem:[#allocation2 + $0x188] sm:$0xff] %vm1588_vm1, %v3001_v55  ;;  %v1847_v35 = vmax.f32 %v3711_v8, %v1843_v32  ;;  %v3776_v8 = vld [vmem:[#allocation2 + $0x178] sm:$0xff]  ;;  %v3112_v48 = vpop.f32.mrb[50].mxu1  ;;  %v1119_v50 = vpop.f32.mrb[51].mxu0  ;;  %v2042_v59 = vadd.f32 %v3570_v41, %v2038_v42 }
 0x14d   : > { %1710 = vst.msk [vmem:[#allocation2 + $0x3c8] sm:$0xff] %vm1588_vm1, %v3109_v26  ;;  %2003 = vst.msk [vmem:[#allocation2 + $0x158] sm:$0xff] %vm1588_vm1, %v1999_v5  ;;  %v1853_v38 = vmax.f32 %v1849_v31, 0.0  ;;  %v1854_v43 = vmax.f32 %v1850_v34, 0.0  ;;  %v1479_v51 = vpop.f32.mrb[51].mxu1  ;;  %v2035_v56 = vld [vmem:[#allocation2 + $0x39c] sm:$0xff]  ;;  %v2041_v58 = vadd.f32 %v3570_v41, %v2037_v40 }
 0x14e   : > { %2024 = vst.msk [vmem:[#allocation2 + $0x160] sm:$0xff] %vm1588_vm1, %v2020_v23  ;;  %1637 = vst.msk [vmem:[#allocation2 + $0x180] sm:$0xff] %vm1588_vm1, %v1109_v24  ;;  %v1851_v44 = vadd.f32 %v3570_v41, %v1847_v35  ;;  %v3781_v49 = vld [vmem:[#allocation2 + $0x170] sm:$0xff]  ;;  %v2039_v4 = vmax.f32 %v2031_v61, %v2035_v56  ;;  %v2046_v13 = vmax.f32 %v2042_v59, 0.0  ;;  %v3817_v40 = vld [vmem:[%s3950_s2] ss:$0 sm:$0xff] }
 0x14f   : > { %1709 = vst.msk [vmem:[#allocation2 + $0x3c0] sm:$0xff] %vm1588_vm1, %v1469_v33  ;;  %1857 = vst.msk [vmem:[#allocation2 + $0x88] sm:$0xff] %vm1588_vm1, %v1853_v38  ;;  %v3007_v62 = vpop.f32.mrb[52].mxu0  ;;  %v2045_v12 = vmax.f32 %v2041_v58, 0.0 }
 0x150   : > { %2431 = vst.msk [vmem:[%s3604_s6 + $0x4c] sm:$0xf] %vm2411_vm2, %v2758_v30  ;;  %v2164_v52 = vld [vmem:[#allocation2 + $0x140] ss:$2 sm:$0xff]  ;;  %v2228_v53 = vld [vmem:[#allocation2 + $0x141] ss:$2 sm:$0xff]  ;;  %v2043_v27 = vadd.f32 %v3570_v41, %v2039_v4 }
 0x151   : > { %2027 = vst.msk [vmem:[#allocation2 + $0x178] sm:$0xff] %vm1588_vm1, %v2023_v39  ;;  %1640 = vst.msk [vmem:[#allocation2 + $0x198] sm:$0xff] %vm1588_vm1, %v3004_v47  ;;  %v1855_v54 = vmax.f32 %v1851_v44, 0.0  ;;  %v2271_v57 = vmax.f32 %v2164_v52, %v2228_v53  ;;  %v3115_v63 = vpop.f32.mrb[52].mxu1  ;;  %v1129_v9 = vpop.f32.mrb[53].mxu0  ;;  %v2053_v18 = vld [vmem:[#allocation2 + $0x3b0] sm:$0xff] }
 0x152   : > { %1712 = vst.msk [vmem:[#allocation2 + $0x3d8] sm:$0xff] %vm1588_vm1, %v3112_v48  ;;  %1858 = vst.msk [vmem:[#allocation2 + $0x90] sm:$0xff] %vm1588_vm1, %v1854_v43  ;;  %v1489_v10 = vpop.f32.mrb[53].mxu1  ;;  %v2047_v46 = vmax.f32 %v2043_v27, 0.0 }
 0x153   : > { %2026 = vst.msk [vmem:[#allocation2 + $0x170] sm:$0xff] %vm1588_vm1, %v2022_v45  ;;  %1639 = vst.msk [vmem:[#allocation2 + $0x190] sm:$0xff] %vm1588_vm1, %v1119_v50  ;;  %v2759_v0 = vpack.c.bf16 %v2271_v57, %v2271_v57  ;;  %v3010_v19 = vpop.f32.mrb[54].mxu0 }
 0x154   : > { %1711 = vst.msk [vmem:[#allocation2 + $0x3d0] sm:$0xff] %vm1588_vm1, %v1479_v51  ;;  %1859 = vst.msk [vmem:[#allocation2 + $0x98] sm:$0xff] %vm1588_vm1, %v1855_v54  ;;  %v2166_v1 = vld [vmem:[#allocation2 + $0x150] ss:$2 sm:$0xff]  ;;  %v2230_v3 = vld [vmem:[#allocation2 + $0x151] ss:$2 sm:$0xff] }
 0x155   : > { %v2168_v2 = vld [vmem:[#allocation2 + $0x160] ss:$2 sm:$0xff]  ;;  %1642 = vst.msk [vmem:[#allocation2 + $0x1a8] sm:$0xff] %vm1588_vm1, %v3007_v62  ;;  %1714 = vst.msk [vmem:[#allocation2 + $0x3e8] sm:$0xff] %vm1588_vm1, %v3115_v63  ;;  %v2232_v5 = vld [vmem:[#allocation2 + $0x161] ss:$2 sm:$0xff]  ;;  %v2272_v6 = vmax.f32 %v2166_v1, %v2230_v3 }
 0x156   : > { %v3794_v7 = vld [vmem:[#allocation2 + $0x180] sm:$0xff]  ;;  %2432 = vst.msk [vmem:[%s3604_s6 + $0x50] sm:$0xf] %vm2411_vm2, %v2759_v0  ;;  %v2273_v11 = vmax.f32 %v2168_v2, %v2232_v5  ;;  %v3118_v20 = vpop.f32.mrb[54].mxu1  ;;  %v1139_v28 = vpop.f32.mrb[55].mxu0  ;;  %v2054_v62 = vld [vmem:[#allocation2 + $0x3b8] sm:$0xff] }
 0x157   : > { %2048 = vst.msk [vmem:[#allocation2 + $0x180] sm:$0xff] %vm1588_vm1, %v2044_v60  ;;  %1641 = vst.msk [vmem:[#allocation2 + $0x1a0] sm:$0xff] %vm1588_vm1, %v1129_v9  ;;  %v2140_v14 = vld [vmem:[#allocation2 + $0x80] ss:$2 sm:$0xff]  ;;  %v2204_v15 = vld [vmem:[#allocation2 + $0x81] ss:$2 sm:$0xff]  ;;  %v2760_v16 = vpack.c.bf16 %v2272_v6, %v2272_v6 }
 0x158   : > { %1713 = vst.msk [vmem:[#allocation2 + $0x3e0] sm:$0xff] %vm1588_vm1, %v1489_v10  ;;  %v2259_v21 = vmax.f32 %v2140_v14, %v2204_v15  ;;  %v2761_v23 = vpack.c.bf16 %v2273_v11, %v2273_v11  ;;  %1644 = vst.msk [vmem:[#allocation2 + $0x1b8] sm:$0xff] %vm1588_vm1, %v3010_v19  ;;  %v1499_v33 = vpop.f32.mrb[55].mxu1  ;;  %v3013_v43 = vpop.f32.mrb[56].mxu0  ;;  %v2055_v60 = vld [vmem:[#allocation2 + $0x3c0] sm:$0xff] }
 0x159   : > { %1716 = vst.msk [vmem:[#allocation2 + $0x3f8] sm:$0xff] %vm1588_vm1, %v3118_v20  ;;  %1643 = vst.msk [vmem:[#allocation2 + $0x1b0] sm:$0xff] %vm1588_vm1, %v1139_v28  ;;  %v3121_v44 = vpop.f32.mrb[56].mxu1 }
 0x15a   : > { %v2170_v25 = vld [vmem:[#allocation2 + $0x170] ss:$2 sm:$0xff]  ;;  %v2234_v55 = vld [vmem:[#allocation2 + $0x171] ss:$2 sm:$0xff]  ;;  %2433 = vst.msk [vmem:[%s3604_s6 + $0x54] sm:$0xf] %vm2411_vm2, %v2760_v16  ;;  %v2747_v41 = vpack.c.bf16 %v2259_v21, %v2259_v21 }
 0x15b   : > { %v1864_v26 = vld [vmem:[#allocation2 + $0x18c] sm:$0xff]  ;;  %v2274_v29 = vmax.f32 %v2170_v25, %v2234_v55  ;;  %v1865_v30 = vld [vmem:[#allocation2 + $0x194] sm:$0xff]  ;;  %2434 = vst.msk [vmem:[%s3604_s6 + $0x58] sm:$0xf] %vm2411_vm2, %v2761_v23  ;;  %v1509_v50 = vpop.f32.mrb[57].mxu1 }
 0x15c   : > { %v1868_v31 = vmax.f32 %v3760_v22, %v1864_v26  ;;  %2049 = vst.msk [vmem:[#allocation2 + $0x188] sm:$0xff] %vm1588_vm1, %v2045_v12  ;;  %v2056_v32 = vld [vmem:[#allocation2 + $0x3cc] sm:$0xff]  ;;  %v2057_v24 = vld [vmem:[#allocation2 + $0x3d4] sm:$0xff]  ;;  %v1869_v36 = vmax.f32 %v3781_v49, %v1865_v30  ;;  %2050 = vst.msk [vmem:[#allocation2 + $0x190] sm:$0xff] %vm1588_vm1, %v2046_v13  ;;  %v1149_v49 = vpop.f32.mrb[57].mxu0  ;;  %v3124_v4 = vpop.f32.mrb[58].mxu1 }
 0x15d   : > { %v2142_v34 = vld [vmem:[#allocation2 + $0x90] ss:$2 sm:$0xff]  ;;  %v2206_v35 = vld [vmem:[#allocation2 + $0x91] ss:$2 sm:$0xff]  ;;  %v2060_v37 = vmax.f32 %v2052_v17, %v2056_v32  ;;  %v2061_v38 = vmax.f32 %v2053_v18, %v2057_v24  ;;  %1715 = vst.msk [vmem:[#allocation2 + $0x3f0] sm:$0xff] %vm1588_vm1, %v1499_v33  ;;  %v2762_v39 = vpack.c.bf16 %v2274_v29, %v2274_v29  ;;  %1646 = vst.msk [vmem:[#allocation2 + $0x1c8] sm:$0xff] %vm1588_vm1, %v3013_v43 }
 0x15e   : > { %v2260_v22 = vmax.f32 %v2142_v34, %v2206_v35  ;;  %v1872_v42 = vadd.f32 %v3817_v40, %v1868_v31  ;;  %2420 = vst.msk [vmem:[%s3604_s6 + $0x20] sm:$0xf] %vm2411_vm2, %v2747_v41  ;;  %v1873_v45 = vadd.f32 %v3817_v40, %v1869_v36  ;;  %v1866_v53 = vld [vmem:[#allocation2 + $0x19c] sm:$0xff]  ;;  %v1867_v54 = vld [vmem:[#allocation2 + $0x1a4] sm:$0xff]  ;;  %v3016_v3 = vpop.f32.mrb[58].mxu0  ;;  %v1519_v13 = vpop.f32.mrb[59].mxu1 }
 0x15f   : > { %v2064_v47 = vadd.f32 %v3817_v40, %v2060_v37  ;;  %v2065_v48 = vadd.f32 %v3817_v40, %v2061_v38  ;;  %1718 = vst.msk [vmem:[#allocation2 + $0x408] sm:$0xff] %vm1588_vm1, %v3121_v44  ;;  %v2059_v56 = vld [vmem:[#allocation2 + $0x3e4] sm:$0xff]  ;;  %1645 = vst.msk [vmem:[#allocation2 + $0x1c0] sm:$0xff] %vm1588_vm1, %v1149_v49  ;;  %v1870_v58 = vmax.f32 %v3776_v8, %v1866_v53  ;;  %v2058_v63 = vld [vmem:[#allocation2 + $0x3dc] sm:$0xff]  ;;  %v1159_v9 = vpop.f32.mrb[59].mxu0 }
 0x160   : > { %v2748_v51 = vpack.c.bf16 %v2260_v22, %v2260_v22  ;;  %2435 = vst.msk [vmem:[%s3604_s6 + $0x5c] sm:$0xf] %vm2411_vm2, %v2762_v39  ;;  %v1876_v52 = vmax.f32 %v1872_v42, 0.0  ;;  %v1877_v57 = vmax.f32 %v1873_v45, 0.0  ;;  %v1871_v59 = vmax.f32 %v3794_v7, %v1867_v54  ;;  %v3019_v19 = vpop.f32.mrb[60].mxu0  ;;  %v3127_v20 = vpop.f32.mrb[60].mxu1 }
 0x161   : > { %1717 = vst.msk [vmem:[#allocation2 + $0x400] sm:$0xff] %vm1588_vm1, %v1509_v50  ;;  %2051 = vst.msk [vmem:[#allocation2 + $0x198] sm:$0xff] %vm1588_vm1, %v2047_v46  ;;  %v2068_v61 = vmax.f32 %v2064_v47, 0.0  ;;  %v2069_v0 = vmax.f32 %v2065_v48, 0.0  ;;  %v2063_v1 = vmax.f32 %v2055_v60, %v2059_v56  ;;  %v2062_v2 = vmax.f32 %v2054_v62, %v2058_v63  ;;  %v3850_v21 = vld [vmem:[#allocation2 + $0x1b8] sm:$0xff]  ;;  %v1884_v23 = vld [vmem:[#allocation2 + $0x1b0] sm:$0xff] }
 0x162   : > { %2421 = vst.msk [vmem:[%s3604_s6 + $0x24] sm:$0xf] %vm2411_vm2, %v2748_v51  ;;  %v1874_v6 = vadd.f32 %v3817_v40, %v1870_v58  ;;  %v1875_v7 = vadd.f32 %v3817_v40, %v1871_v59  ;;  %v1169_v25 = vpop.f32.mrb[61].mxu0  ;;  %v1529_v55 = vpop.f32.mrb[61].mxu1  ;;  %v2077_v48 = vld [vmem:[#allocation2 + $0x3f8] sm:$0xff] }
 0x163   : > { %1880 = vst.msk [vmem:[#allocation2 + $0xa0] sm:$0xff] %vm1588_vm1, %v1876_v52  ;;  %1881 = vst.msk [vmem:[#allocation2 + $0xa8] sm:$0xff] %vm1588_vm1, %v1877_v57  ;;  %v2172_v8 = vld [vmem:[#allocation2 + $0x180] ss:$2 sm:$0xff]  ;;  %v2236_v5 = vld [vmem:[#allocation2 + $0x181] ss:$2 sm:$0xff]  ;;  %v2067_v11 = vadd.f32 %v3817_v40, %v2063_v1  ;;  %v2066_v12 = vadd.f32 %v3817_v40, %v2062_v2 }
 0x164   : > { %2072 = vst.msk [vmem:[#allocation2 + $0x1a0] sm:$0xff] %vm1588_vm1, %v2068_v61  ;;  %1648 = vst.msk [vmem:[#allocation2 + $0x1d8] sm:$0xff] %vm1588_vm1, %v3016_v3  ;;  %v2275_v10 = vmax.f32 %v2172_v8, %v2236_v5  ;;  %v1878_v14 = vmax.f32 %v1874_v6, 0.0  ;;  %v1879_v15 = vmax.f32 %v1875_v7, 0.0  ;;  %v3022_v31 = vpop.f32.mrb[62].mxu0  ;;  %v3130_v32 = vpop.f32.mrb[62].mxu1 }
 0x165   : > { %1720 = vst.msk [vmem:[#allocation2 + $0x418] sm:$0xff] %vm1588_vm1, %v3124_v4  ;;  %2073 = vst.msk [vmem:[#allocation2 + $0x1a8] sm:$0xff] %vm1588_vm1, %v2069_v0  ;;  %v2071_v17 = vmax.f32 %v2067_v11, 0.0  ;;  %v2070_v18 = vmax.f32 %v2066_v12, 0.0  ;;  %v1179_v36 = vpop.f32.mrb[63].mxu0  ;;  %v2076_v38 = vld [vmem:[#allocation2 + $0x3f0] sm:$0xff] }
 0x166   : > { %1647 = vst.msk [vmem:[#allocation2 + $0x1d0] sm:$0xff] %vm1588_vm1, %v1159_v9  ;;  %1719 = vst.msk [vmem:[#allocation2 + $0x410] sm:$0xff] %vm1588_vm1, %v1519_v13  ;;  %v2763_v16 = vpack.c.bf16 %v2275_v10, %v2275_v10  ;;  %v1539_v42 = vpop.f32.mrb[63].mxu1  ;;  %v1886_v49 = vld [vmem:[#allocation2 + $0x1c0] sm:$0xff]  ;;  %v1887_v13 = vld [vmem:[#allocation2 + $0x1c8] sm:$0xff] }
 0x167   : > { %1882 = vst.msk [vmem:[#allocation2 + $0xb0] sm:$0xff] %vm1588_vm1, %v1878_v14  ;;  %1883 = vst.msk [vmem:[#allocation2 + $0xb8] sm:$0xff] %vm1588_vm1, %v1879_v15  ;;  %v3025_v51 = vpop.f32.mrb[64].mxu0 }
 0x168   : > { %1650 = vst.msk [vmem:[#allocation2 + $0x1e8] sm:$0xff] %vm1588_vm1, %v3019_v19  ;;  %1722 = vst.msk [vmem:[#allocation2 + $0x428] sm:$0xff] %vm1588_vm1, %v3127_v20  ;;  %v2174_v26 = vld [vmem:[#allocation2 + $0x190] ss:$2 sm:$0xff]  ;;  %v2238_v27 = vld [vmem:[#allocation2 + $0x191] ss:$2 sm:$0xff] }
 0x169   : > { %2436 = vst.msk [vmem:[%s3604_s6 + $0x60] sm:$0xf] %vm2411_vm2, %v2763_v16  ;;  %v2276_v28 = vmax.f32 %v2174_v26, %v2238_v27  ;;  %v3133_v52 = vpop.f32.mrb[64].mxu1  ;;  %v1189_v59 = vpop.f32.mrb[65].mxu0  ;;  %v2078_v4 = vld [vmem:[#allocation2 + $0x400] sm:$0xff]  ;;  %v2079_v19 = vld [vmem:[#allocation2 + $0x408] sm:$0xff] }
 0x16a   : > { %2075 = vst.msk [vmem:[#allocation2 + $0x1b8] sm:$0xff] %vm1588_vm1, %v2071_v17  ;;  %2074 = vst.msk [vmem:[#allocation2 + $0x1b0] sm:$0xff] %vm1588_vm1, %v2070_v18  ;;  %v2144_v29 = vld [vmem:[#allocation2 + $0xa0] ss:$2 sm:$0xff]  ;;  %v2208_v30 = vld [vmem:[#allocation2 + $0xa1] ss:$2 sm:$0xff] }
 0x16b   : > { %1649 = vst.msk [vmem:[#allocation2 + $0x1e0] sm:$0xff] %vm1588_vm1, %v1169_v25  ;;  %1721 = vst.msk [vmem:[#allocation2 + $0x420] sm:$0xff] %vm1588_vm1, %v1529_v55  ;;  %v2261_v24 = vmax.f32 %v2144_v29, %v2208_v30  ;;  %v2764_v34 = vpack.c.bf16 %v2276_v28, %v2276_v28  ;;  %v1549_v2 = vpop.f32.mrb[65].mxu1  ;;  %v3028_v11 = vpop.f32.mrb[66].mxu0 }
 0x16c   : > { %v2176_v33 = vld [vmem:[#allocation2 + $0x1a0] ss:$2 sm:$0xff]  ;;  %v2240_v41 = vld [vmem:[#allocation2 + $0x1a1] ss:$2 sm:$0xff]  ;;  %1652 = vst.msk [vmem:[#allocation2 + $0x1f8] sm:$0xff] %vm1588_vm1, %v3022_v31  ;;  %1724 = vst.msk [vmem:[#allocation2 + $0x438] sm:$0xff] %vm1588_vm1, %v3130_v32 }
 0x16d   : > { %v1888_v35 = vld [vmem:[#allocation2 + $0x1d4] sm:$0xff]  ;;  %v2277_v37 = vmax.f32 %v2176_v33, %v2240_v41  ;;  %1651 = vst.msk [vmem:[#allocation2 + $0x1f0] sm:$0xff] %vm1588_vm1, %v1179_v36  ;;  %v2749_v43 = vpack.c.bf16 %v2261_v24, %v2261_v24  ;;  %1723 = vst.msk [vmem:[#allocation2 + $0x430] sm:$0xff] %vm1588_vm1, %v1539_v42  ;;  %v3136_v12 = vpop.f32.mrb[66].mxu1  ;;  %v1199_v17 = vpop.f32.mrb[67].mxu0 }
 0x16e   : > { %v1892_v22 = vmax.f32 %v1884_v23, %v1888_v35  ;;  %v2080_v39 = vld [vmem:[#allocation2 + $0x414] sm:$0xff]  ;;  %2437 = vst.msk [vmem:[%s3604_s6 + $0x64] sm:$0xf] %vm2411_vm2, %v2764_v34  ;;  %v1559_v18 = vpop.f32.mrb[67].mxu1 }
 0x16f   : > { %v2084_v44 = vmax.f32 %v2076_v38, %v2080_v39  ;;  %v2146_v45 = vld [vmem:[#allocation2 + $0xb0] ss:$2 sm:$0xff]  ;;  %v2210_v46 = vld [vmem:[#allocation2 + $0xb1] ss:$2 sm:$0xff]  ;;  %v2765_v47 = vpack.c.bf16 %v2277_v37, %v2277_v37  ;;  %2422 = vst.msk [vmem:[%s3604_s6 + $0x28] sm:$0xf] %vm2411_vm2, %v2749_v43 }
 0x170   : > { %v1896_v50 = vadd.f32 %v3817_v40, %v1892_v22  ;;  %v2262_v53 = vmax.f32 %v2146_v45, %v2210_v46  ;;  %1654 = vst.msk [vmem:[#allocation2 + $0x208] sm:$0xff] %vm1588_vm1, %v3025_v51  ;;  %1726 = vst.msk [vmem:[#allocation2 + $0x448] sm:$0xff] %vm1588_vm1, %v3133_v52  ;;  %v3031_v30 = vpop.f32.mrb[68].mxu0  ;;  %v3139_v31 = vpop.f32.mrb[68].mxu1 }
 0x171   : > { %v2178_v54 = vld [vmem:[#allocation2 + $0x1b0] ss:$2 sm:$0xff]  ;;  %v2242_v56 = vld [vmem:[#allocation2 + $0x1b1] ss:$2 sm:$0xff]  ;;  %v2088_v57 = vadd.f32 %v3817_v40, %v2084_v44  ;;  %2438 = vst.msk [vmem:[%s3604_s6 + $0x68] sm:$0xf] %vm2411_vm2, %v2765_v47 }
 0x172   : > { %v1889_v58 = vld [vmem:[#allocation2 + $0x1dc] sm:$0xff]  ;;  %v2278_v61 = vmax.f32 %v2178_v54, %v2242_v56  ;;  %v1900_v60 = vmax.f32 %v1896_v50, 0.0  ;;  %v1890_v62 = vld [vmem:[#allocation2 + $0x1e4] sm:$0xff]  ;;  %1653 = vst.msk [vmem:[#allocation2 + $0x200] sm:$0xff] %vm1588_vm1, %v1189_v59  ;;  %v2750_v3 = vpack.c.bf16 %v2262_v53, %v2262_v53  ;;  %1725 = vst.msk [vmem:[#allocation2 + $0x440] sm:$0xff] %vm1588_vm1, %v1549_v2  ;;  %v1209_v24 = vpop.f32.mrb[69].mxu0 }
 0x173   : > { %v1893_v63 = vmax.f32 %v3850_v21, %v1889_v58  ;;  %v2081_v0 = vld [vmem:[#allocation2 + $0x41c] sm:$0xff]  ;;  %v2082_v1 = vld [vmem:[#allocation2 + $0x424] sm:$0xff]  ;;  %v2092_v8 = vmax.f32 %v2088_v57, 0.0  ;;  %v1894_v5 = vmax.f32 %v1886_v49, %v1890_v62  ;;  %1656 = vst.msk [vmem:[#allocation2 + $0x218] sm:$0xff] %vm1588_vm1, %v3028_v11  ;;  %1728 = vst.msk [vmem:[#allocation2 + $0x458] sm:$0xff] %vm1588_vm1, %v3136_v12  ;;  %v1569_v33 = vpop.f32.mrb[69].mxu1 }
 0x174   : > { %v2085_v6 = vmax.f32 %v2077_v48, %v2081_v0  ;;  %v2766_v7 = vpack.c.bf16 %v2278_v61, %v2278_v61  ;;  %1904 = vst.msk [vmem:[#allocation2 + $0xc0] sm:$0xff] %vm1588_vm1, %v1900_v60  ;;  %v2086_v10 = vmax.f32 %v2078_v4, %v2082_v1  ;;  %v1891_v16 = vld [vmem:[#allocation2 + $0x1ec] sm:$0xff]  ;;  %1655 = vst.msk [vmem:[#allocation2 + $0x210] sm:$0xff] %vm1588_vm1, %v1199_v17  ;;  %v3034_v35 = vpop.f32.mrb[70].mxu0  ;;  %v3142_v36 = vpop.f32.mrb[70].mxu1  ;;  %v1908_v42 = vld [vmem:[#allocation2 + $0x1f8] sm:$0xff] }
 0x175   : > { %v1897_v9 = vadd.f32 %v3817_v40, %v1893_v63  ;;  %2423 = vst.msk [vmem:[%s3604_s6 + $0x2c] sm:$0xf] %vm2411_vm2, %v2750_v3  ;;  %v1898_v14 = vadd.f32 %v3817_v40, %v1894_v5  ;;  %v1895_v23 = vmax.f32 %v1887_v13, %v1891_v16  ;;  %v2083_v25 = vld [vmem:[#allocation2 + $0x42c] sm:$0xff]  ;;  %v1219_v37 = vpop.f32.mrb[71].mxu0  ;;  %v1579_v38 = vpop.f32.mrb[71].mxu1  ;;  %v2100_v43 = vld [vmem:[#allocation2 + $0x438] sm:$0xff] }
 0x176   : > { %2096 = vst.msk [vmem:[#allocation2 + $0x1c0] sm:$0xff] %vm1588_vm1, %v2092_v8  ;;  %v2089_v15 = vadd.f32 %v3817_v40, %v2085_v6  ;;  %v2090_v21 = vadd.f32 %v3817_v40, %v2086_v10  ;;  %1727 = vst.msk [vmem:[#allocation2 + $0x450] sm:$0xff] %vm1588_vm1, %v1559_v18  ;;  %v2087_v27 = vmax.f32 %v2079_v19, %v2083_v25 }
 0x177   : > { %2439 = vst.msk [vmem:[%s3604_s6 + $0x6c] sm:$0xf] %vm2411_vm2, %v2766_v7  ;;  %v1901_v20 = vmax.f32 %v1897_v9, 0.0  ;;  %v1902_v55 = vmax.f32 %v1898_v14, 0.0  ;;  %v1899_v29 = vadd.f32 %v3817_v40, %v1895_v23  ;;  %v1910_v11 = vld [vmem:[#allocation2 + $0x208] sm:$0xff] }
 0x178   : > { %v2093_v26 = vmax.f32 %v2089_v15, 0.0  ;;  %v2094_v28 = vmax.f32 %v2090_v21, 0.0  ;;  %v2091_v32 = vadd.f32 %v3817_v40, %v2087_v27  ;;  %1658 = vst.msk [vmem:[#allocation2 + $0x228] sm:$0xff] %vm1588_vm1, %v3031_v30  ;;  %1730 = vst.msk [vmem:[#allocation2 + $0x468] sm:$0xff] %vm1588_vm1, %v3139_v31  ;;  %v2102_v18 = vld [vmem:[#allocation2 + $0x448] sm:$0xff] }
 0x179   : > { %1905 = vst.msk [vmem:[#allocation2 + $0xc8] sm:$0xff] %vm1588_vm1, %v1901_v20  ;;  %1906 = vst.msk [vmem:[#allocation2 + $0xd0] sm:$0xff] %vm1588_vm1, %v1902_v55  ;;  %v1903_v41 = vmax.f32 %v1899_v29, 0.0  ;;  %v1909_v47 = vld [vmem:[#allocation2 + $0x200] sm:$0xff] }
 0x17a   : > { %2097 = vst.msk [vmem:[#allocation2 + $0x1c8] sm:$0xff] %vm1588_vm1, %v2093_v26  ;;  %2098 = vst.msk [vmem:[#allocation2 + $0x1d0] sm:$0xff] %vm1588_vm1, %v2094_v28  ;;  %v2095_v34 = vmax.f32 %v2091_v32, 0.0  ;;  %v2101_v53 = vld [vmem:[#allocation2 + $0x440] sm:$0xff] }
 0x17b   : > { %1657 = vst.msk [vmem:[#allocation2 + $0x220] sm:$0xff] %vm1588_vm1, %v1209_v24  ;;  %1729 = vst.msk [vmem:[#allocation2 + $0x460] sm:$0xff] %vm1588_vm1, %v1569_v33  ;;  %v1911_v12 = vld [vmem:[#allocation2 + $0x210] sm:$0xff] }
 0x17c   : > { %1907 = vst.msk [vmem:[#allocation2 + $0xd8] sm:$0xff] %vm1588_vm1, %v1903_v41  ;;  %2099 = vst.msk [vmem:[#allocation2 + $0x1d8] sm:$0xff] %vm1588_vm1, %v2095_v34 }
 0x17d   : > { %1660 = vst.msk [vmem:[#allocation2 + $0x238] sm:$0xff] %vm1588_vm1, %v3034_v35  ;;  %1732 = vst.msk [vmem:[#allocation2 + $0x478] sm:$0xff] %vm1588_vm1, %v3142_v36  ;;  %v2103_v19 = vld [vmem:[#allocation2 + $0x450] sm:$0xff] }
 0x17e   : > { %1659 = vst.msk [vmem:[#allocation2 + $0x230] sm:$0xff] %vm1588_vm1, %v1219_v37  ;;  %1731 = vst.msk [vmem:[#allocation2 + $0x470] sm:$0xff] %vm1588_vm1, %v1579_v38 }
 0x180   : > { %v2148_v22 = vld [vmem:[#allocation2 + $0xc0] ss:$2 sm:$0xff]  ;;  %v2212_v39 = vld [vmem:[#allocation2 + $0xc1] ss:$2 sm:$0xff] }
 0x181   : > { %v2263_v44 = vmax.f32 %v2148_v22, %v2212_v39  ;;  %v2180_v45 = vld [vmem:[#allocation2 + $0x1c0] ss:$2 sm:$0xff]  ;;  %v2244_v46 = vld [vmem:[#allocation2 + $0x1c1] ss:$2 sm:$0xff] }
 0x182   : > { %v2279_v48 = vmax.f32 %v2180_v45, %v2244_v46  ;;  %v1912_v49 = vld [vmem:[#allocation2 + $0x21c] sm:$0xff]  ;;  %v1913_v50 = vld [vmem:[#allocation2 + $0x224] sm:$0xff] }
 0x183   : > { %v2104_v51 = vld [vmem:[#allocation2 + $0x45c] sm:$0xff]  ;;  %v2751_v52 = vpack.c.bf16 %v2263_v44, %v2263_v44  ;;  %v1916_v54 = vmax.f32 %v1908_v42, %v1912_v49  ;;  %v1917_v56 = vmax.f32 %v1909_v47, %v1913_v50  ;;  %v2105_v57 = vld [vmem:[#allocation2 + $0x464] sm:$0xff] }
 0x184   : > { %v2108_v58 = vmax.f32 %v2100_v43, %v2104_v51  ;;  %v2767_v59 = vpack.c.bf16 %v2279_v48, %v2279_v48  ;;  %v2150_v61 = vld [vmem:[#allocation2 + $0xd0] ss:$2 sm:$0xff]  ;;  %v2214_v60 = vld [vmem:[#allocation2 + $0xd1] ss:$2 sm:$0xff]  ;;  %v2109_v62 = vmax.f32 %v2101_v53, %v2105_v57 }
 0x185   : > { %2424 = vst.msk [vmem:[%s3604_s6 + $0x30] sm:$0xf] %vm2411_vm2, %v2751_v52  ;;  %v2264_v63 = vmax.f32 %v2150_v61, %v2214_v60  ;;  %v2182_v0 = vld [vmem:[#allocation2 + $0x1d0] ss:$2 sm:$0xff]  ;;  %v2246_v1 = vld [vmem:[#allocation2 + $0x1d1] ss:$2 sm:$0xff]  ;;  %v1920_v2 = vadd.f32 %v3817_v40, %v1916_v54  ;;  %v1921_v3 = vadd.f32 %v3817_v40, %v1917_v56 }
 0x186   : > { %v2112_v4 = vadd.f32 %v3817_v40, %v2108_v58  ;;  %2440 = vst.msk [vmem:[%s3604_s6 + $0x70] sm:$0xf] %vm2411_vm2, %v2767_v59  ;;  %v2280_v8 = vmax.f32 %v2182_v0, %v2246_v1  ;;  %v2113_v5 = vadd.f32 %v3817_v40, %v2109_v62  ;;  %v1914_v6 = vld [vmem:[#allocation2 + $0x22c] sm:$0xff]  ;;  %v1915_v7 = vld [vmem:[#allocation2 + $0x234] sm:$0xff] }
 0x187   : > { %v2106_v9 = vld [vmem:[#allocation2 + $0x46c] sm:$0xff]  ;;  %v2752_v10 = vpack.c.bf16 %v2264_v63, %v2264_v63  ;;  %v1924_v13 = vmax.f32 %v1920_v2, 0.0  ;;  %v1925_v14 = vmax.f32 %v1921_v3, 0.0  ;;  %v2107_v16 = vld [vmem:[#allocation2 + $0x474] sm:$0xff]  ;;  %v1918_v21 = vmax.f32 %v1910_v11, %v1914_v6 }
 0x188   : > { %v2116_v15 = vmax.f32 %v2112_v4, 0.0  ;;  %v2768_v17 = vpack.c.bf16 %v2280_v8, %v2280_v8  ;;  %v2117_v20 = vmax.f32 %v2113_v5, 0.0  ;;  %v1919_v23 = vmax.f32 %v1911_v12, %v1915_v7 }
 0x189   : > { %2425 = vst.msk [vmem:[%s3604_s6 + $0x34] sm:$0xf] %vm2411_vm2, %v2752_v10  ;;  %v2110_v25 = vmax.f32 %v2102_v18, %v2106_v9  ;;  %v2111_v55 = vmax.f32 %v2103_v19, %v2107_v16  ;;  %v1922_v26 = vadd.f32 %v3817_v40, %v1918_v21 }
 0x18a   : > { %1928 = vst.msk [vmem:[#allocation2 + $0xe0] sm:$0xff] %vm1588_vm1, %v1924_v13  ;;  %1929 = vst.msk [vmem:[#allocation2 + $0xe8] sm:$0xff] %vm1588_vm1, %v1925_v14  ;;  %v1923_v27 = vadd.f32 %v3817_v40, %v1919_v23 }
 0x18b   : > { %2120 = vst.msk [vmem:[#allocation2 + $0x1e0] sm:$0xff] %vm1588_vm1, %v2116_v15  ;;  %2121 = vst.msk [vmem:[#allocation2 + $0x1e8] sm:$0xff] %vm1588_vm1, %v2117_v20  ;;  %v2114_v28 = vadd.f32 %v3817_v40, %v2110_v25  ;;  %v2115_v29 = vadd.f32 %v3817_v40, %v2111_v55  ;;  %v1926_v30 = vmax.f32 %v1922_v26, 0.0 }
 0x18c   : > { %2441 = vst.msk [vmem:[%s3604_s6 + $0x74] sm:$0xf] %vm2411_vm2, %v2768_v17  ;;  %v1927_v31 = vmax.f32 %v1923_v27, 0.0 }
 0x18d   : > { %v2118_v32 = vmax.f32 %v2114_v28, 0.0  ;;  %v2119_v24 = vmax.f32 %v2115_v29, 0.0  ;;  %1930 = vst.msk [vmem:[#allocation2 + $0xf0] sm:$0xff] %vm1588_vm1, %v1926_v30 }
 0x18e   : > { %1931 = vst.msk [vmem:[#allocation2 + $0xf8] sm:$0xff] %vm1588_vm1, %v1927_v31 }
 0x18f   : > { %2122 = vst.msk [vmem:[#allocation2 + $0x1f0] sm:$0xff] %vm1588_vm1, %v2118_v32  ;;  %2123 = vst.msk [vmem:[#allocation2 + $0x1f8] sm:$0xff] %vm1588_vm1, %v2119_v24 }
 0x191   : > { %v2152_v33 = vld [vmem:[#allocation2 + $0xe0] ss:$2 sm:$0xff]  ;;  %v2216_v41 = vld [vmem:[#allocation2 + $0xe1] ss:$2 sm:$0xff] }
 0x192   : > { %v2265_v34 = vmax.f32 %v2152_v33, %v2216_v41  ;;  %v2184_v35 = vld [vmem:[#allocation2 + $0x1e0] ss:$2 sm:$0xff]  ;;  %v2248_v40 = vld [vmem:[#allocation2 + $0x1e1] ss:$2 sm:$0xff] }
 0x193   : > { %v2281_v36 = vmax.f32 %v2184_v35, %v2248_v40 }
 0x194   : > { %v2753_v37 = vpack.c.bf16 %v2265_v34, %v2265_v34 }
 0x195   : > { %v2769_v38 = vpack.c.bf16 %v2281_v36, %v2281_v36  ;;  %v2154_v22 = vld [vmem:[#allocation2 + $0xf0] ss:$2 sm:$0xff]  ;;  %v2218_v39 = vld [vmem:[#allocation2 + $0xf1] ss:$2 sm:$0xff] }
 0x196   : > { %2426 = vst.msk [vmem:[%s3604_s6 + $0x38] sm:$0xf] %vm2411_vm2, %v2753_v37  ;;  %v2266_v42 = vmax.f32 %v2154_v22, %v2218_v39  ;;  %v2186_v43 = vld [vmem:[#allocation2 + $0x1f0] ss:$2 sm:$0xff]  ;;  %v2250_v44 = vld [vmem:[#allocation2 + $0x1f1] ss:$2 sm:$0xff] }
 0x197   : > { %2442 = vst.msk [vmem:[%s3604_s6 + $0x78] sm:$0xf] %vm2411_vm2, %v2769_v38  ;;  %v2282_v45 = vmax.f32 %v2186_v43, %v2250_v44 }
 0x198   : > { %v2754_v46 = vpack.c.bf16 %v2266_v42, %v2266_v42 }
 0x199   : > { %v2770_v47 = vpack.c.bf16 %v2282_v45, %v2282_v45 }
 0x19a   : > { %2427 = vst.msk [vmem:[%s3604_s6 + $0x3c] sm:$0xf] %vm2411_vm2, %v2754_v46 }
 0x19b   : > { %2443 = vst.msk [vmem:[%s3604_s6 + $0x7c] sm:$0xf] %vm2411_vm2, %v2770_v47 }
 0x19c PF: > { %s13_s14 = sadd.s32 1, %s3203_s14   ;;  %s3952_s12 = smov %s3199_s13 }
 0x19d   : > { %p10_p5 = scmp.ge.s32.totalorder %s13_s14, 4   ;;  %s3953_s13 = smov %s3955_s15 }
 0x19f   :  { %12 = sbr.rel (!%p10_p5) target bundleno = 2 (0x2), region = 131 }

</bundles_post_ra>
